<compile_context>
chip_gen: v7x
topology: tpu7x:2x2x1
jax: 0.10.0
libtpu: 0.0.40
codegen_flags: <defaults>
</compile_context>

<pallas_src>
import functools

import jax
import jax.numpy as jnp
from jax.experimental import pallas as pl
from jax.experimental.pallas import tpu as pltpu

_LANES = 128   # lane (last) axis of the batch slab
_SUB = 16      # sublane granule (16 rows keeps bf16 blocks natively tiled)


def _hybrid_kernel(x_ref, w1_ref, b1_ref, ph_ref, w2_ref, b2_ref, w3_ref,
                   b3_ref, o_ref):
    """One batch tile, batch laid out as a dense (rows, 128) slab.

    x_ref : (4, R_tile, 128)  VMEM  bf16/f32 input features (one plane per feature)
    w1_ref: (Q, 4)            SMEM  fc1 weight (out, in)
    b1_ref: (1, Q)            SMEM  fc1 bias
    ph_ref: (1, Q)            SMEM  precomputed quantum-layer phase sum
    w2_ref: (2, Q)            SMEM  fc2 weight
    b2_ref: (1, 2)            SMEM  fc2 bias
    w3_ref: (1, 2)            SMEM  fc3 weight
    b3_ref: (1, 1)            SMEM  fc3 bias
    o_ref : (R_tile, 128)     VMEM  f32 sigmoid output
    """
    n_q, n_in = w1_ref.shape
    n_h2 = w2_ref.shape[0]

    # Full (R_tile, 128) feature planes, upcast once to f32.
    xs = [x_ref[k].astype(jnp.float32) for k in range(n_in)]

    # fc1 + tanh, then quantum surrogate q_j = cos(h1_j + phase_j).
    # Tiny contractions -> unrolled scalar-broadcast FMAs on the VPU.
    q_rows = []
    for j in range(n_q):
        acc = w1_ref[j, 0] * xs[0]
        for k in range(1, n_in):
            acc = acc + w1_ref[j, k] * xs[k]
        h1_j = jnp.tanh(acc + b1_ref[0, j])
        q_rows.append(jnp.cos(h1_j + ph_ref[0, j]))

    # fc2 + tanh.
    h2_rows = []
    for m in range(n_h2):
        acc = w2_ref[m, 0] * q_rows[0]
        for j in range(1, n_q):
            acc = acc + w2_ref[m, j] * q_rows[j]
        h2_rows.append(jnp.tanh(acc + b2_ref[0, m]))

    # fc3 + sigmoid, via the exact identity sigmoid(z) = 0.5*(1 + tanh(z/2))
    # (single EUP op, no approx-reciprocal error).
    z = b3_ref[0, 0] * jnp.ones_like(h2_rows[0])
    for m in range(n_h2):
        z = z + w3_ref[0, m] * h2_rows[m]
    o_ref[...] = 0.5 * (1.0 + jnp.tanh(0.5 * z))


def _smem_spec():
    return pl.BlockSpec(memory_space=pltpu.MemorySpace.SMEM)


def _cdiv(a, b):
    return -(-a // b)


def _choose_layout(batch, max_rows_per_tile):
    """Pick (r_tile, n_tiles, r_total) for the (rows, 128) batch slab."""
    slab = _SUB * _LANES                         # minimum padding granule
    n_slabs = max(1, _cdiv(batch, slab))
    max_slabs_per_tile = max(1, max_rows_per_tile // _SUB)
    n_tiles = _cdiv(n_slabs, max_slabs_per_tile)
    # v7x megacore: give both TensorCores work whenever there are >= 2 slabs.
    if n_tiles == 1 and n_slabs >= 2:
        n_tiles = 2
    slabs_per_tile = _cdiv(n_slabs, n_tiles)
    n_tiles = _cdiv(n_slabs, slabs_per_tile)
    r_tile = slabs_per_tile * _SUB
    r_total = n_tiles * r_tile
    return r_tile, n_tiles, r_total


@functools.partial(jax.jit,
                   static_argnames=("stream_dtype", "max_rows_per_tile"))
def advanced_hybrid_forward(x, w1, b1, qw, w2, b2, w3, b3, *,
                            stream_dtype=jnp.bfloat16,
                            max_rows_per_tile=1024):
    """x: (B, 4) f32. w1:(Q,4) b1:(1,Q) qw:(L,Q) w2:(2,Q) b2:(1,2) w3:(1,2) b3:(1,1)."""
    B, n_in = x.shape
    n_q = w1.shape[0]
    n_h2 = w2.shape[0]

    # Quantum-layer surrogate phase, hoisted out of the kernel.
    phase = jnp.sum(qw, axis=0, keepdims=True)                     # (1, Q)

    # Dense (rows, 128) batch slab; pad only up to the (16, 128) slab granule
    # / chosen tile, never to a multiple of a huge fixed tb.
    r_tile, n_tiles, r_total = _choose_layout(B, max_rows_per_tile)
    b_pad = r_total * _LANES

    x_slab = jnp.pad(x.T.astype(stream_dtype),
                     ((0, 0), (0, b_pad - B))).reshape(n_in, r_total, _LANES)

    stream_bytes = jnp.dtype(stream_dtype).itemsize
    cost = pl.CostEstimate(
        flops=b_pad * (n_q * (2 * n_in + 2) + n_h2 * (2 * n_q + 1)
                       + (2 * n_h2 + 1) + 4),
        transcendentals=b_pad * (2 * n_q + n_h2 + 1),
        bytes_accessed=b_pad * (n_in * stream_bytes + 4),
    )

    out_slab = pl.pallas_call(
        _hybrid_kernel,
        out_shape=jax.ShapeDtypeStruct((r_total, _LANES), jnp.float32),
        grid=(n_tiles,),
        in_specs=[
            pl.BlockSpec((n_in, r_tile, _LANES), lambda i: (0, i, 0)),  # x
            _smem_spec(),  # w1
            _smem_spec(),  # b1
            _smem_spec(),  # phase
            _smem_spec(),  # w2
            _smem_spec(),  # b2
            _smem_spec(),  # w3
            _smem_spec(),  # b3
        ],
        out_specs=pl.BlockSpec((r_tile, _LANES), lambda i: (i, 0)),
        compiler_params=pltpu.CompilerParams(
            dimension_semantics=("parallel",),
            vmem_limit_bytes=32 * 1024 * 1024),
        cost_estimate=cost,
    )(x_slab, w1, b1, phase, w2, b2, w3, b3)

    return out_slab.reshape(-1)[:B].reshape(B, 1)


def _kaiming_uniform(key, shape_out_in):
    # nn.init.kaiming_uniform_ (a=0, gain=sqrt(2)): bound = sqrt(6 / fan_in)
    fan_in = shape_out_in[1]
    bound = (6.0 / fan_in) ** 0.5
    return jax.random.uniform(key, shape_out_in, jnp.float32, -bound, bound)


def _linear_bias(key, fan_in, fan_out):
    # PyTorch default Linear bias init: U(-1/sqrt(fan_in), 1/sqrt(fan_in))
    bound = 1.0 / (fan_in ** 0.5)
    return jax.random.uniform(key, (1, fan_out), jnp.float32, -bound, bound)


if __name__ == "__main__":
    n_qubits = 4
    n_layers = 3          # weight_shapes = {"weights": (n_layers, n_qubits)}
    batch = 8

    root = jax.random.PRNGKey(0)
    keys = jax.random.split(root, 8)

    # fc1: Linear(4, n_qubits)
    w1 = _kaiming_uniform(keys[0], (n_qubits, 4))
    b1 = _linear_bias(keys[1], 4, n_qubits)
    # quantum layer trainable weights
    qw = jax.random.uniform(keys[2], (n_layers, n_qubits), jnp.float32,
                            0.0, 2.0 * 3.14159265)
    # fc2: Linear(n_qubits, 2)
    w2 = _kaiming_uniform(keys[3], (2, n_qubits))
    b2 = _linear_bias(keys[4], n_qubits, 2)
    # fc3: Linear(2, 1)
    w3 = _kaiming_uniform(keys[5], (1, 2))
    b3 = _linear_bias(keys[6], 2, 1)

    x = jax.random.normal(keys[7], (batch, 4), jnp.float32)

    out = advanced_hybrid_forward(x, w1, b1, qw, w2, b2, w3, b3)
    out = jax.block_until_ready(out)

    # Pure-JAX reference (same quantum surrogate, same bf16 input rounding
    # that the kernel's streaming cast applies).
    x_q = x.astype(jnp.bfloat16).astype(jnp.float32)
    h1 = jnp.tanh(x_q @ w1.T + b1)
    q = jnp.cos(h1 + jnp.sum(qw, axis=0, keepdims=True))
    h2 = jnp.tanh(q @ w2.T + b2)
    ref = jax.nn.sigmoid(h2 @ w3.T + b3)

    assert out.shape == (batch, 1)
    assert jnp.allclose(out, ref, atol=1e-3, rtol=1e-3), (
        float(jnp.max(jnp.abs(out - ref))))

    print("KERNEL_OK")
</pallas_src>

<mosaic_0001>
module attributes {stable_mosaic.version = 11 : i64} {
  func.func @_hybrid_kernel(%arg0: i32, %arg1: memref<4x16x128xbf16, #tpu.memory_space<vmem>>, %arg2: memref<4x4xf32, #tpu.memory_space<smem>>, %arg3: memref<1x4xf32, #tpu.memory_space<smem>>, %arg4: memref<1x4xf32, #tpu.memory_space<smem>>, %arg5: memref<2x4xf32, #tpu.memory_space<smem>>, %arg6: memref<1x2xf32, #tpu.memory_space<smem>>, %arg7: memref<1x2xf32, #tpu.memory_space<smem>>, %arg8: memref<1x1xf32, #tpu.memory_space<smem>>, %arg9: memref<16x128xf32, #tpu.memory_space<vmem>>) attributes {dimension_semantics = [#tpu.dimension_semantics<parallel>], iteration_bounds = array<i64: 1>, scalar_prefetch = 0 : i64, scratch_operands = 0 : i64, tpu.core_type = #tpu.core_type<tc>, window_params = [{transform_indices = @transform_0, window_bounds = array<i64: 4, 16, 128>}, {transform_indices = @transform_1, window_bounds = array<i64: 4, 4>}, {transform_indices = @transform_2, window_bounds = array<i64: 1, 4>}, {transform_indices = @transform_3, window_bounds = array<i64: 1, 4>}, {transform_indices = @transform_4, window_bounds = array<i64: 2, 4>}, {transform_indices = @transform_5, window_bounds = array<i64: 1, 2>}, {transform_indices = @transform_6, window_bounds = array<i64: 1, 2>}, {transform_indices = @transform_7, window_bounds = array<i64: 1, 1>}, {transform_indices = @transform_8, window_bounds = array<i64: 16, 128>}]} {
    %c0 = arith.constant 0 : index
    %c0_0 = arith.constant 0 : index
    %c0_1 = arith.constant 0 : index
    %0 = vector.load %arg1[%c0, %c0_0, %c0_1] : memref<4x16x128xbf16, #tpu.memory_space<vmem>>, vector<1x16x128xbf16>
    %1 = vector.shape_cast %0 : vector<1x16x128xbf16> to vector<16x128xbf16>
    %2 = arith.extf %1 : vector<16x128xbf16> to vector<16x128xf32>
    %c1 = arith.constant 1 : index
    %c0_2 = arith.constant 0 : index
    %c0_3 = arith.constant 0 : index
    %3 = vector.load %arg1[%c1, %c0_2, %c0_3] : memref<4x16x128xbf16, #tpu.memory_space<vmem>>, vector<1x16x128xbf16>
    %4 = vector.shape_cast %3 : vector<1x16x128xbf16> to vector<16x128xbf16>
    %5 = arith.extf %4 : vector<16x128xbf16> to vector<16x128xf32>
    %c2 = arith.constant 2 : index
    %c0_4 = arith.constant 0 : index
    %c0_5 = arith.constant 0 : index
    %6 = vector.load %arg1[%c2, %c0_4, %c0_5] : memref<4x16x128xbf16, #tpu.memory_space<vmem>>, vector<1x16x128xbf16>
    %7 = vector.shape_cast %6 : vector<1x16x128xbf16> to vector<16x128xbf16>
    %8 = arith.extf %7 : vector<16x128xbf16> to vector<16x128xf32>
    %c3 = arith.constant 3 : index
    %c0_6 = arith.constant 0 : index
    %c0_7 = arith.constant 0 : index
    %9 = vector.load %arg1[%c3, %c0_6, %c0_7] : memref<4x16x128xbf16, #tpu.memory_space<vmem>>, vector<1x16x128xbf16>
    %10 = vector.shape_cast %9 : vector<1x16x128xbf16> to vector<16x128xbf16>
    %11 = arith.extf %10 : vector<16x128xbf16> to vector<16x128xf32>
    %c0_8 = arith.constant 0 : index
    %c0_9 = arith.constant 0 : index
    %12 = memref.load %arg2[%c0_8, %c0_9] : memref<4x4xf32, #tpu.memory_space<smem>>
    %13 = vector.broadcast %12 : f32 to vector<16x128xf32>
    %14 = arith.mulf %13, %2 : vector<16x128xf32>
    %c0_10 = arith.constant 0 : index
    %c1_11 = arith.constant 1 : index
    %15 = memref.load %arg2[%c0_10, %c1_11] : memref<4x4xf32, #tpu.memory_space<smem>>
    %16 = vector.broadcast %15 : f32 to vector<16x128xf32>
    %17 = arith.mulf %16, %5 : vector<16x128xf32>
    %18 = arith.addf %14, %17 : vector<16x128xf32>
    %c0_12 = arith.constant 0 : index
    %c2_13 = arith.constant 2 : index
    %19 = memref.load %arg2[%c0_12, %c2_13] : memref<4x4xf32, #tpu.memory_space<smem>>
    %20 = vector.broadcast %19 : f32 to vector<16x128xf32>
    %21 = arith.mulf %20, %8 : vector<16x128xf32>
    %22 = arith.addf %18, %21 : vector<16x128xf32>
    %c0_14 = arith.constant 0 : index
    %c3_15 = arith.constant 3 : index
    %23 = memref.load %arg2[%c0_14, %c3_15] : memref<4x4xf32, #tpu.memory_space<smem>>
    %24 = vector.broadcast %23 : f32 to vector<16x128xf32>
    %25 = arith.mulf %24, %11 : vector<16x128xf32>
    %26 = arith.addf %22, %25 : vector<16x128xf32>
    %c0_16 = arith.constant 0 : index
    %c0_17 = arith.constant 0 : index
    %27 = memref.load %arg3[%c0_16, %c0_17] : memref<1x4xf32, #tpu.memory_space<smem>>
    %28 = vector.broadcast %27 : f32 to vector<16x128xf32>
    %29 = arith.addf %26, %28 : vector<16x128xf32>
    %30 = math.tanh %29 : vector<16x128xf32>
    %c0_18 = arith.constant 0 : index
    %c0_19 = arith.constant 0 : index
    %31 = memref.load %arg4[%c0_18, %c0_19] : memref<1x4xf32, #tpu.memory_space<smem>>
    %32 = vector.broadcast %31 : f32 to vector<16x128xf32>
    %33 = arith.addf %30, %32 : vector<16x128xf32>
    %34 = math.cos %33 : vector<16x128xf32>
    %c1_20 = arith.constant 1 : index
    %c0_21 = arith.constant 0 : index
    %35 = memref.load %arg2[%c1_20, %c0_21] : memref<4x4xf32, #tpu.memory_space<smem>>
    %36 = vector.broadcast %35 : f32 to vector<16x128xf32>
    %37 = arith.mulf %36, %2 : vector<16x128xf32>
    %c1_22 = arith.constant 1 : index
    %c1_23 = arith.constant 1 : index
    %38 = memref.load %arg2[%c1_22, %c1_23] : memref<4x4xf32, #tpu.memory_space<smem>>
    %39 = vector.broadcast %38 : f32 to vector<16x128xf32>
    %40 = arith.mulf %39, %5 : vector<16x128xf32>
    %41 = arith.addf %37, %40 : vector<16x128xf32>
    %c1_24 = arith.constant 1 : index
    %c2_25 = arith.constant 2 : index
    %42 = memref.load %arg2[%c1_24, %c2_25] : memref<4x4xf32, #tpu.memory_space<smem>>
    %43 = vector.broadcast %42 : f32 to vector<16x128xf32>
    %44 = arith.mulf %43, %8 : vector<16x128xf32>
    %45 = arith.addf %41, %44 : vector<16x128xf32>
    %c1_26 = arith.constant 1 : index
    %c3_27 = arith.constant 3 : index
    %46 = memref.load %arg2[%c1_26, %c3_27] : memref<4x4xf32, #tpu.memory_space<smem>>
    %47 = vector.broadcast %46 : f32 to vector<16x128xf32>
    %48 = arith.mulf %47, %11 : vector<16x128xf32>
    %49 = arith.addf %45, %48 : vector<16x128xf32>
    %c0_28 = arith.constant 0 : index
    %c1_29 = arith.constant 1 : index
    %50 = memref.load %arg3[%c0_28, %c1_29] : memref<1x4xf32, #tpu.memory_space<smem>>
    %51 = vector.broadcast %50 : f32 to vector<16x128xf32>
    %52 = arith.addf %49, %51 : vector<16x128xf32>
    %53 = math.tanh %52 : vector<16x128xf32>
    %c0_30 = arith.constant 0 : index
    %c1_31 = arith.constant 1 : index
    %54 = memref.load %arg4[%c0_30, %c1_31] : memref<1x4xf32, #tpu.memory_space<smem>>
    %55 = vector.broadcast %54 : f32 to vector<16x128xf32>
    %56 = arith.addf %53, %55 : vector<16x128xf32>
    %57 = math.cos %56 : vector<16x128xf32>
    %c2_32 = arith.constant 2 : index
    %c0_33 = arith.constant 0 : index
    %58 = memref.load %arg2[%c2_32, %c0_33] : memref<4x4xf32, #tpu.memory_space<smem>>
    %59 = vector.broadcast %58 : f32 to vector<16x128xf32>
    %60 = arith.mulf %59, %2 : vector<16x128xf32>
    %c2_34 = arith.constant 2 : index
    %c1_35 = arith.constant 1 : index
    %61 = memref.load %arg2[%c2_34, %c1_35] : memref<4x4xf32, #tpu.memory_space<smem>>
    %62 = vector.broadcast %61 : f32 to vector<16x128xf32>
    %63 = arith.mulf %62, %5 : vector<16x128xf32>
    %64 = arith.addf %60, %63 : vector<16x128xf32>
    %c2_36 = arith.constant 2 : index
    %c2_37 = arith.constant 2 : index
    %65 = memref.load %arg2[%c2_36, %c2_37] : memref<4x4xf32, #tpu.memory_space<smem>>
    %66 = vector.broadcast %65 : f32 to vector<16x128xf32>
    %67 = arith.mulf %66, %8 : vector<16x128xf32>
    %68 = arith.addf %64, %67 : vector<16x128xf32>
    %c2_38 = arith.constant 2 : index
    %c3_39 = arith.constant 3 : index
    %69 = memref.load %arg2[%c2_38, %c3_39] : memref<4x4xf32, #tpu.memory_space<smem>>
    %70 = vector.broadcast %69 : f32 to vector<16x128xf32>
    %71 = arith.mulf %70, %11 : vector<16x128xf32>
    %72 = arith.addf %68, %71 : vector<16x128xf32>
    %c0_40 = arith.constant 0 : index
    %c2_41 = arith.constant 2 : index
    %73 = memref.load %arg3[%c0_40, %c2_41] : memref<1x4xf32, #tpu.memory_space<smem>>
    %74 = vector.broadcast %73 : f32 to vector<16x128xf32>
    %75 = arith.addf %72, %74 : vector<16x128xf32>
    %76 = math.tanh %75 : vector<16x128xf32>
    %c0_42 = arith.constant 0 : index
    %c2_43 = arith.constant 2 : index
    %77 = memref.load %arg4[%c0_42, %c2_43] : memref<1x4xf32, #tpu.memory_space<smem>>
    %78 = vector.broadcast %77 : f32 to vector<16x128xf32>
    %79 = arith.addf %76, %78 : vector<16x128xf32>
    %80 = math.cos %79 : vector<16x128xf32>
    %c3_44 = arith.constant 3 : index
    %c0_45 = arith.constant 0 : index
    %81 = memref.load %arg2[%c3_44, %c0_45] : memref<4x4xf32, #tpu.memory_space<smem>>
    %82 = vector.broadcast %81 : f32 to vector<16x128xf32>
    %83 = arith.mulf %82, %2 : vector<16x128xf32>
    %c3_46 = arith.constant 3 : index
    %c1_47 = arith.constant 1 : index
    %84 = memref.load %arg2[%c3_46, %c1_47] : memref<4x4xf32, #tpu.memory_space<smem>>
    %85 = vector.broadcast %84 : f32 to vector<16x128xf32>
    %86 = arith.mulf %85, %5 : vector<16x128xf32>
    %87 = arith.addf %83, %86 : vector<16x128xf32>
    %c3_48 = arith.constant 3 : index
    %c2_49 = arith.constant 2 : index
    %88 = memref.load %arg2[%c3_48, %c2_49] : memref<4x4xf32, #tpu.memory_space<smem>>
    %89 = vector.broadcast %88 : f32 to vector<16x128xf32>
    %90 = arith.mulf %89, %8 : vector<16x128xf32>
    %91 = arith.addf %87, %90 : vector<16x128xf32>
    %c3_50 = arith.constant 3 : index
    %c3_51 = arith.constant 3 : index
    %92 = memref.load %arg2[%c3_50, %c3_51] : memref<4x4xf32, #tpu.memory_space<smem>>
    %93 = vector.broadcast %92 : f32 to vector<16x128xf32>
    %94 = arith.mulf %93, %11 : vector<16x128xf32>
    %95 = arith.addf %91, %94 : vector<16x128xf32>
    %c0_52 = arith.constant 0 : index
    %c3_53 = arith.constant 3 : index
    %96 = memref.load %arg3[%c0_52, %c3_53] : memref<1x4xf32, #tpu.memory_space<smem>>
    %97 = vector.broadcast %96 : f32 to vector<16x128xf32>
    %98 = arith.addf %95, %97 : vector<16x128xf32>
    %99 = math.tanh %98 : vector<16x128xf32>
    %c0_54 = arith.constant 0 : index
    %c3_55 = arith.constant 3 : index
    %100 = memref.load %arg4[%c0_54, %c3_55] : memref<1x4xf32, #tpu.memory_space<smem>>
    %101 = vector.broadcast %100 : f32 to vector<16x128xf32>
    %102 = arith.addf %99, %101 : vector<16x128xf32>
    %103 = math.cos %102 : vector<16x128xf32>
    %c0_56 = arith.constant 0 : index
    %c0_57 = arith.constant 0 : index
    %104 = memref.load %arg5[%c0_56, %c0_57] : memref<2x4xf32, #tpu.memory_space<smem>>
    %105 = vector.broadcast %104 : f32 to vector<16x128xf32>
    %106 = arith.mulf %105, %34 : vector<16x128xf32>
    %c0_58 = arith.constant 0 : index
    %c1_59 = arith.constant 1 : index
    %107 = memref.load %arg5[%c0_58, %c1_59] : memref<2x4xf32, #tpu.memory_space<smem>>
    %108 = vector.broadcast %107 : f32 to vector<16x128xf32>
    %109 = arith.mulf %108, %57 : vector<16x128xf32>
    %110 = arith.addf %106, %109 : vector<16x128xf32>
    %c0_60 = arith.constant 0 : index
    %c2_61 = arith.constant 2 : index
    %111 = memref.load %arg5[%c0_60, %c2_61] : memref<2x4xf32, #tpu.memory_space<smem>>
    %112 = vector.broadcast %111 : f32 to vector<16x128xf32>
    %113 = arith.mulf %112, %80 : vector<16x128xf32>
    %114 = arith.addf %110, %113 : vector<16x128xf32>
    %c0_62 = arith.constant 0 : index
    %c3_63 = arith.constant 3 : index
    %115 = memref.load %arg5[%c0_62, %c3_63] : memref<2x4xf32, #tpu.memory_space<smem>>
    %116 = vector.broadcast %115 : f32 to vector<16x128xf32>
    %117 = arith.mulf %116, %103 : vector<16x128xf32>
    %118 = arith.addf %114, %117 : vector<16x128xf32>
    %c0_64 = arith.constant 0 : index
    %c0_65 = arith.constant 0 : index
    %119 = memref.load %arg6[%c0_64, %c0_65] : memref<1x2xf32, #tpu.memory_space<smem>>
    %120 = vector.broadcast %119 : f32 to vector<16x128xf32>
    %121 = arith.addf %118, %120 : vector<16x128xf32>
    %122 = math.tanh %121 : vector<16x128xf32>
    %c1_66 = arith.constant 1 : index
    %c0_67 = arith.constant 0 : index
    %123 = memref.load %arg5[%c1_66, %c0_67] : memref<2x4xf32, #tpu.memory_space<smem>>
    %124 = vector.broadcast %123 : f32 to vector<16x128xf32>
    %125 = arith.mulf %124, %34 : vector<16x128xf32>
    %c1_68 = arith.constant 1 : index
    %c1_69 = arith.constant 1 : index
    %126 = memref.load %arg5[%c1_68, %c1_69] : memref<2x4xf32, #tpu.memory_space<smem>>
    %127 = vector.broadcast %126 : f32 to vector<16x128xf32>
    %128 = arith.mulf %127, %57 : vector<16x128xf32>
    %129 = arith.addf %125, %128 : vector<16x128xf32>
    %c1_70 = arith.constant 1 : index
    %c2_71 = arith.constant 2 : index
    %130 = memref.load %arg5[%c1_70, %c2_71] : memref<2x4xf32, #tpu.memory_space<smem>>
    %131 = vector.broadcast %130 : f32 to vector<16x128xf32>
    %132 = arith.mulf %131, %80 : vector<16x128xf32>
    %133 = arith.addf %129, %132 : vector<16x128xf32>
    %c1_72 = arith.constant 1 : index
    %c3_73 = arith.constant 3 : index
    %134 = memref.load %arg5[%c1_72, %c3_73] : memref<2x4xf32, #tpu.memory_space<smem>>
    %135 = vector.broadcast %134 : f32 to vector<16x128xf32>
    %136 = arith.mulf %135, %103 : vector<16x128xf32>
    %137 = arith.addf %133, %136 : vector<16x128xf32>
    %c0_74 = arith.constant 0 : index
    %c1_75 = arith.constant 1 : index
    %138 = memref.load %arg6[%c0_74, %c1_75] : memref<1x2xf32, #tpu.memory_space<smem>>
    %139 = vector.broadcast %138 : f32 to vector<16x128xf32>
    %140 = arith.addf %137, %139 : vector<16x128xf32>
    %141 = math.tanh %140 : vector<16x128xf32>
    %c0_76 = arith.constant 0 : index
    %c0_77 = arith.constant 0 : index
    %142 = memref.load %arg8[%c0_76, %c0_77] : memref<1x1xf32, #tpu.memory_space<smem>>
    %cst = arith.constant 1.000000e+00 : f32
    %143 = vector.broadcast %cst : f32 to vector<16x128xf32>
    %144 = vector.broadcast %142 : f32 to vector<16x128xf32>
    %145 = arith.mulf %144, %143 : vector<16x128xf32>
    %c0_78 = arith.constant 0 : index
    %c0_79 = arith.constant 0 : index
    %146 = memref.load %arg7[%c0_78, %c0_79] : memref<1x2xf32, #tpu.memory_space<smem>>
    %147 = vector.broadcast %146 : f32 to vector<16x128xf32>
    %148 = arith.mulf %147, %122 : vector<16x128xf32>
    %149 = arith.addf %145, %148 : vector<16x128xf32>
    %c0_80 = arith.constant 0 : index
    %c1_81 = arith.constant 1 : index
    %150 = memref.load %arg7[%c0_80, %c1_81] : memref<1x2xf32, #tpu.memory_space<smem>>
    %151 = vector.broadcast %150 : f32 to vector<16x128xf32>
    %152 = arith.mulf %151, %141 : vector<16x128xf32>
    %153 = arith.addf %149, %152 : vector<16x128xf32>
    %cst_82 = arith.constant 5.000000e-01 : f32
    %154 = vector.broadcast %cst_82 : f32 to vector<16x128xf32>
    %155 = arith.mulf %154, %153 : vector<16x128xf32>
    %156 = math.tanh %155 : vector<16x128xf32>
    %cst_83 = arith.constant 1.000000e+00 : f32
    %157 = vector.broadcast %cst_83 : f32 to vector<16x128xf32>
    %158 = arith.addf %157, %156 : vector<16x128xf32>
    %cst_84 = arith.constant 5.000000e-01 : f32
    %159 = vector.broadcast %cst_84 : f32 to vector<16x128xf32>
    %160 = arith.mulf %159, %158 : vector<16x128xf32>
    %c0_85 = arith.constant 0 : index
    %c0_86 = arith.constant 0 : index
    %161 = vector.load %arg9[%c0_85, %c0_86] : memref<16x128xf32, #tpu.memory_space<vmem>>, vector<16x128xf32>
    tpu.vector_store %arg9[%c0_85, %c0_86], %160 {strides = array<i32>} : memref<16x128xf32, #tpu.memory_space<vmem>>, vector<16x128xf32>,
    return
  }
  func.func @transform_0(%arg0: i32) -> (i32, i32, i32) {
    %c0_i32 = arith.constant 0 : i32
    %c0_i32_0 = arith.constant 0 : i32
    %c0_i32_1 = arith.constant 0 : i32
    return %c0_i32, %arg0, %c0_i32_0 : i32, i32, i32
  }
  func.func @transform_1(%arg0: i32) -> (i32, i32) {
    %c0_i32 = arith.constant 0 : i32
    %c0_i32_0 = arith.constant 0 : i32
    %c0_i32_1 = arith.constant 0 : i32
    return %c0_i32, %c0_i32_0 : i32, i32
  }
  func.func @transform_2(%arg0: i32) -> (i32, i32) {
    %c0_i32 = arith.constant 0 : i32
    %c0_i32_0 = arith.constant 0 : i32
    %c0_i32_1 = arith.constant 0 : i32
    return %c0_i32, %c0_i32_0 : i32, i32
  }
  func.func @transform_3(%arg0: i32) -> (i32, i32) {
    %c0_i32 = arith.constant 0 : i32
    %c0_i32_0 = arith.constant 0 : i32
    %c0_i32_1 = arith.constant 0 : i32
    return %c0_i32, %c0_i32_0 : i32, i32
  }
  func.func @transform_4(%arg0: i32) -> (i32, i32) {
    %c0_i32 = arith.constant 0 : i32
    %c0_i32_0 = arith.constant 0 : i32
    %c0_i32_1 = arith.constant 0 : i32
    return %c0_i32, %c0_i32_0 : i32, i32
  }
  func.func @transform_5(%arg0: i32) -> (i32, i32) {
    %c0_i32 = arith.constant 0 : i32
    %c0_i32_0 = arith.constant 0 : i32
    %c0_i32_1 = arith.constant 0 : i32
    return %c0_i32, %c0_i32_0 : i32, i32
  }
  func.func @transform_6(%arg0: i32) -> (i32, i32) {
    %c0_i32 = arith.constant 0 : i32
    %c0_i32_0 = arith.constant 0 : i32
    %c0_i32_1 = arith.constant 0 : i32
    return %c0_i32, %c0_i32_0 : i32, i32
  }
  func.func @transform_7(%arg0: i32) -> (i32, i32) {
    %c0_i32 = arith.constant 0 : i32
    %c0_i32_0 = arith.constant 0 : i32
    %c0_i32_1 = arith.constant 0 : i32
    return %c0_i32, %c0_i32_0 : i32, i32
  }
  func.func @transform_8(%arg0: i32) -> (i32, i32) {
    %c0_i32 = arith.constant 0 : i32
    %c0_i32_0 = arith.constant 0 : i32
    return %arg0, %c0_i32 : i32, i32
  }
}

</mosaic_0001>

<bundles_post_ra>
// kernel: advanced_hybrid_forward.1
= control target key start
LH: loop header
LB: loop body
LE: loop exit
PB: predicated region body
PF: predicated region fallthrough
CT: control target
= control target key end

     0   :  { %14 = vsyncpa [#allocation4], 0  ;;  %s2589_s0 = inlined_call_operand.vmem [shape: bf16[4,16,128], index: 0, kind: input, shape index: {}]   ;;  %s2590_s1 = inlined_call_operand.vmem [shape: f32[4,4], index: 1, kind: input, shape index: {}]   ;;  %s2591_s2 = inlined_call_operand.vmem [shape: f32[1,4], index: 2, kind: input, shape index: {}]   ;;  %s2592_s3 = inlined_call_operand.vmem [shape: f32[1,4], index: 3, kind: input, shape index: {}]   ;;  %s2593_s4 = inlined_call_operand.vmem [shape: f32[2,4], index: 4, kind: input, shape index: {}]   ;;  %s2594_s5 = inlined_call_operand.vmem [shape: f32[1,2], index: 5, kind: input, shape index: {}]   ;;  %s2595_s6 = inlined_call_operand.vmem [shape: f32[1,2], index: 6, kind: input, shape index: {}]   ;;  %s2596_s7 = inlined_call_operand.<no memory space> [shape: f32[1,1], index: 7, kind: input, shape index: {}]   ;;  %s2597_s8 = inlined_call_operand.vmem [shape: f32[16,128], index: 8, kind: output, shape index: {}]  }
   0x1   :  { %15 = vsyncpa [#allocation6], 0 }
   0x2   :  { %16 = vsyncpa [#allocation9], 0  ;;  %s36_s29 = sshll.u32 %s2591_s2, 4  ;;  %s37_s29 = int_to_ptr.vmem [resolvable:$true] %s36_s29 }
   0x3   :  { %17 = vsyncpa [#allocation12], 0  ;;  %s56_s10 = sshll.u32 %s2593_s4, 4  ;;  %s1351_s11 = scalar_lea.vmem %s37_s29, 16  ;;  %s57_s10 = int_to_ptr.vmem [resolvable:$true] %s56_s10 }
   0x4   :  { %p1352_p0 = scmp.ne.s32.totalorder %s37_s29, %s1351_s11  ;;  %p1356_p1 = scmp.lt.s32.totalorder %s37_s29, %s37_s29 }
   0x5   :  { %p1357_p2 = scmp.lt.s32.totalorder %s1351_s11, %s1351_s11 }
   0x7   :  { %p1358_p3 = por %p1357_p2, %p1356_p1 }
   0x9   :  { %p1359_p4 = pnand %p1358_p3, %p1352_p0 }
   0xb   :  { %1362 = shalt.err (!%p1359_p4)
}
   0xc   :  { %s1431_s12 = smov [#allocation5]   ;;  %s1363_s13 = scalar_lea.vmem %s57_s10, 32 }
   0xd   :  { %39 = dma.vmem_to_smem %s37_s29, 16, %s1431_s12, [#allocation6]  }
   0xe   :  { %p1364_p5 = scmp.ne.s32.totalorder %s57_s10, %s1363_s13  ;;  %p1368_p6 = scmp.lt.s32.totalorder %s57_s10, %s57_s10 }
   0xf   :  { %p1369_p7 = scmp.lt.s32.totalorder %s1363_s13, %s1363_s13 }
  0x11   :  { %p1370_p8 = por %p1369_p7, %p1368_p6 }
  0x13   :  { %p1371_p9 = pnand %p1370_p8, %p1364_p5 }
  0x15   :  { %1374 = shalt.err (!%p1371_p9)
}
  0x16   :  { %s1432_s2 = smov [#allocation8]   ;;  %s26_s15 = sshll.u32 %s2590_s1, 4  ;;  %s27_s15 = int_to_ptr.vmem [resolvable:$true] %s26_s15 }
  0x17   :  { %59 = dma.vmem_to_smem %s57_s10, 32, %s1432_s2, [#allocation9]  }
  0x18   :  { %s46_s18 = sshll.u32 %s2592_s3, 4  ;;  %s1375_s19 = scalar_lea.vmem %s27_s15, 64  ;;  %s47_s18 = int_to_ptr.vmem [resolvable:$true] %s46_s18 }
  0x19   :  { %p1376_p10 = scmp.ne.s32.totalorder %s27_s15, %s1375_s19  ;;  %p1380_p11 = scmp.lt.s32.totalorder %s27_s15, %s27_s15 }
  0x1a   :  { %p1381_p12 = scmp.lt.s32.totalorder %s1375_s19, %s1375_s19 }
  0x1c   :  { %p1382_p13 = por %p1381_p12, %p1380_p11 }
  0x1e   :  { %p1383_p0 = pnand %p1382_p13, %p1376_p10 }
  0x20   :  { %1386 = shalt.err (!%p1383_p0)
}
  0x21   :  { %s1433_s20 = smov [#allocation3]   ;;  %s1387_s21 = scalar_lea.vmem %s47_s18, 16 }
  0x22   :  { %29 = dma.vmem_to_smem %s27_s15, 64, %s1433_s20, [#allocation4]  }
  0x23   :  { %p1388_p1 = scmp.ne.s32.totalorder %s47_s18, %s1387_s21  ;;  %p1392_p2 = scmp.lt.s32.totalorder %s47_s18, %s47_s18 }
  0x24   :  { %p1393_p3 = scmp.lt.s32.totalorder %s1387_s21, %s1387_s21 }
  0x26   :  { %p1394_p4 = por %p1393_p3, %p1392_p2 }
  0x28   :  { %p1395_p5 = pnand %p1394_p4, %p1388_p1 }
  0x2a   :  { %1398 = shalt.err (!%p1395_p5)
}
  0x2b   :  { %s1434_s1 = smov [#allocation7]   ;;  %s66_s23 = sshll.u32 %s2594_s5, 4  ;;  %s67_s23 = int_to_ptr.vmem [resolvable:$true] %s66_s23 }
  0x2c   :  { %49 = dma.vmem_to_smem %s47_s18, 16, %s1434_s1, [#allocation6]  }
  0x2d   :  { %s76_s26 = sshll.u32 %s2595_s6, 4  ;;  %s1399_s27 = scalar_lea.vmem %s67_s23, 16  ;;  %s77_s26 = int_to_ptr.vmem [resolvable:$true] %s76_s26 }
  0x2e   :  { %p1400_p6 = scmp.ne.s32.totalorder %s67_s23, %s1399_s27  ;;  %p1404_p7 = scmp.lt.s32.totalorder %s67_s23, %s67_s23 }
  0x2f   :  { %p1405_p8 = scmp.lt.s32.totalorder %s1399_s27, %s1399_s27 }
  0x31   :  { %p1406_p9 = por %p1405_p8, %p1404_p7 }
  0x33   :  { %p1407_p10 = pnand %p1406_p9, %p1400_p6 }
  0x35   :  { %1410 = shalt.err (!%p1407_p10)
}
  0x36   :  { %s1435_s28 = smov [#allocation10]   ;;  %s1411_s29 = scalar_lea.vmem %s77_s26, 16 }
  0x37   :  { %69 = dma.vmem_to_smem %s67_s23, 16, %s1435_s28, [#allocation9]  }
  0x38   :  { %p1412_p11 = scmp.ne.s32.totalorder %s77_s26, %s1411_s29  ;;  %p1416_p12 = scmp.lt.s32.totalorder %s77_s26, %s77_s26 }
  0x39   :  { %p1417_p13 = scmp.lt.s32.totalorder %s1411_s29, %s1411_s29 }
  0x3b   :  { %p1418_p0 = por %p1417_p13, %p1416_p12 }
  0x3d   :  { %p1419_p1 = pnand %p1418_p0, %p1412_p11 }
  0x3f   :  { %1422 = shalt.err (!%p1419_p1)
}
  0x40   :  { %s1436_s5 = smov [#allocation11]  }
  0x41   :  { %79 = dma.vmem_to_smem %s77_s26, 16, %s1436_s5, [#allocation12]  }
  0x42   :  { %1423 = dma.done.wait [#allocation4], 64  }
  0x43   :  { %1424 = vsyncadd [#allocation4], 4294967232 }
  0x44   :  { %1425 = dma.done.wait [#allocation6], 32  }
  0x45   :  { %1426 = vsyncadd [#allocation6], 4294967264 }
  0x46   :  { %1427 = dma.done.wait [#allocation9], 48  }
  0x47   :  { %1428 = vsyncadd [#allocation9], 4294967248 }
  0x48   :  { %1429 = dma.done.wait [#allocation12], 16  }
  0x49   :  { %1430 = vsyncadd [#allocation12], 4294967280 }
  0x4a   :  { %100 = sfence }
  0x4b   :  { %v1229_v0 = vld [vmem:[%s2589_s0] sm:$0xff]   ;;  %s120_s9 = sld [smem:[#allocation3]]  ;;  %v1244_v1 = vld [vmem:[%s2589_s0 + $0x8] sm:$0xff]   ;;  %v1245_v2 = vld [vmem:[%s2589_s0 + $0x10] sm:$0xff]   ;;  %s1166_s2 = sld [smem:[#allocation3 + $0x1]] }
  0x4c   :  { %s1167_s4 = sld [smem:[#allocation3 + $0x2]]  ;;  %s1168_s14 = sld [smem:[#allocation3 + $0x3]]  ;;  %v1515_v3 = vunpack.c.l.bf16 %v1229_v0  ;;  %v1517_v4 = vunpack.c.h.bf16 %v1229_v0  ;;  %v1246_v5 = vld [vmem:[%s2589_s0 + $0x18] sm:$0xff]   ;;  %v1522_v6 = vunpack.c.l.bf16 %v1244_v1  ;;  %v1524_v7 = vunpack.c.h.bf16 %v1244_v1 }
  0x4d   :  { %v1526_v8 = vunpack.c.l.bf16 %v1245_v2  ;;  %v1528_v9 = vunpack.c.h.bf16 %v1245_v2  ;;  %s1530_s17 = sld [smem:[#allocation5]]  ;;  %s1534_s19 = sld [smem:[#allocation3 + $0x81]]  ;;  %v1536_v10 = vunpack.c.l.bf16 %v1246_v5  ;;  %v1538_v11 = vunpack.c.h.bf16 %v1246_v5 }
  0x4e   :  { %s1532_s18 = sld [smem:[#allocation3 + $0x80]]  ;;  %s1540_s0 = sld [smem:[#allocation3 + $0x82]] }
  0x4f   :  { %s1542_s20 = sld [smem:[#allocation3 + $0x83]]  ;;  %s1560_s21 = sld [smem:[#allocation5 + $0x1]] }
  0x50   :  { %s148_s1 = sld [smem:[#allocation7]]  ;;  %s1571_s3 = sld [smem:[#allocation7 + $0x1]] }
  0x51   :  { %v121_v12 = vstv %s120_s9  ;;  %v125_v15 = vstv %s1166_s2  ;;  %s1596_s22 = sld [smem:[#allocation3 + $0x100]]  ;;  %s1598_s23 = sld [smem:[#allocation3 + $0x101]] }
  0x52   :  { %v122_v13 = vmul.f32 %v1515_v3, %v121_v12  ;;  %v123_v14 = vmul.f32 %v1517_v4, %v121_v12  ;;  %v131_v16 = vstv %s1167_s4  ;;  %v126_v17 = vmul.f32 %v1522_v6, %v125_v15  ;;  %s1627_s24 = sld [smem:[#allocation3 + $0x102]]  ;;  %s1666_s25 = sld [smem:[#allocation3 + $0x103]] }
  0x53   :  { %v127_v18 = vmul.f32 %v1524_v7, %v125_v15  ;;  %v132_v19 = vmul.f32 %v1526_v8, %v131_v16  ;;  %v133_v20 = vmul.f32 %v1528_v9, %v131_v16  ;;  %v137_v21 = vstv %s1168_s14  ;;  %s1740_s26 = sld [smem:[#allocation5 + $0x2]]  ;;  %s1852_s28 = sld [smem:[#allocation3 + $0x180]] }
  0x54   :  { %v128_v22 = vadd.f32 %v126_v17, %v122_v13  ;;  %v138_v24 = vmul.f32 %v1536_v10, %v137_v21  ;;  %v139_v25 = vmul.f32 %v1538_v11, %v137_v21  ;;  %v359_v26 = vstv %s1532_s18  ;;  %s1797_s27 = sld [smem:[#allocation7 + $0x2]]  ;;  %s1867_s29 = sld [smem:[#allocation3 + $0x181]] }
  0x55   :  { %v129_v23 = vadd.f32 %v127_v18, %v123_v14  ;;  %v363_v27 = vstv %s1534_s19  ;;  %v360_v30 = vmul.f32 %v1515_v3, %v359_v26  ;;  %v143_v31 = vstv %s1530_s17  ;;  %s1882_s5 = sld [smem:[#allocation3 + $0x182]]  ;;  %s1905_s6 = sld [smem:[#allocation3 + $0x183]] }
  0x56   :  { %v134_v28 = vadd.f32 %v132_v19, %v128_v22  ;;  %v364_v32 = vmul.f32 %v1522_v6, %v363_v27  ;;  %v369_v33 = vstv %s1540_s0  ;;  %v375_v37 = vstv %s1542_s20  ;;  %s1973_s30 = sld [smem:[#allocation5 + $0x3]]  ;;  %s2370_s10 = sld [smem:[#allocation8]] }
  0x57   :  { %v135_v29 = vadd.f32 %v133_v20, %v129_v23  ;;  %v370_v36 = vmul.f32 %v1526_v8, %v369_v33  ;;  %v376_v42 = vmul.f32 %v1536_v10, %v375_v37  ;;  %v381_v44 = vstv %s1560_s21  ;;  %s1978_s9 = sld [smem:[#allocation7 + $0x3]]  ;;  %s2392_s11 = sld [smem:[#allocation8 + $0x1]] }
  0x58   :  { %v140_v34 = vadd.f32 %v138_v24, %v134_v28  ;;  %v366_v38 = vadd.f32 %v364_v32, %v360_v30  ;;  %v149_v46 = vstv %s148_s1  ;;  %v361_v53 = vmul.f32 %v1517_v4, %v359_v26  ;;  %s2408_s12 = sld [smem:[#allocation8 + $0x80]]  ;;  %s2411_s13 = sld [smem:[#allocation8 + $0x81]] }
  0x59   :  { %v141_v35 = vadd.f32 %v139_v25, %v135_v29  ;;  %v365_v54 = vmul.f32 %v1524_v7, %v363_v27  ;;  %v371_v60 = vmul.f32 %v1528_v9, %v369_v33  ;;  %v387_v0 = vstv %s1571_s3  ;;  %s2435_s2 = sld [smem:[#allocation8 + $0x2]]  ;;  %s2473_s14 = sld [smem:[#allocation8 + $0x3]] }
  0x5a   :  { %v144_v39 = vadd.f32 %v143_v31, %v140_v34  ;;  %v372_v41 = vadd.f32 %v370_v36, %v366_v38  ;;  %v377_v5 = vmul.f32 %v1538_v11, %v375_v37  ;;  %v1437_v18 = vmov 683565275   ;;  %s2441_s4 = sld [smem:[#allocation8 + $0x82]]  ;;  %s2476_s15 = sld [smem:[#allocation8 + $0x83]] }
  0x5b   :  { %v145_v40 = vadd.f32 %v143_v31, %v141_v35  ;;  %v367_v59 = vadd.f32 %v365_v54, %v361_v53  ;;  %v1438_v20 = vmov 2475754826   ;;  %v2607_v22 = vmov 2131351028   ;;  %s2493_s16 = sld [smem:[#allocation10]]  ;;  %s2495_s17 = sld [smem:[#allocation10 + $0x1]] }
  0x5c   :  { %1291 = vtanh.f32 %v144_v39  ;;  %v378_v43 = vadd.f32 %v376_v42, %v372_v41  ;;  %v1440_v24 = vmov 2102212464   ;;  %v2603_v26 = vmov 920167782   ;;  %s2550_s18 = sld [smem:[#allocation11]]  ;;  %s2552_s19 = sld [smem:[#allocation11 + $0x1]] }
  0x5d   :  { %1293 = vtanh.f32 %v145_v40  ;;  %v373_v2 = vadd.f32 %v371_v60, %v367_v59  ;;  %v1442_v34 = vmov 1326507024  }
  0x5e   :  { %v382_v45 = vadd.f32 %v381_v44, %v378_v43 }
  0x5f   :  { %v379_v28 = vadd.f32 %v377_v5, %v373_v2 }
  0x60   :  { %1295 = vtanh.f32 %v382_v45 }
  0x61   :  { %v383_v45 = vadd.f32 %v381_v44, %v379_v28 }
  0x63   :  { %1297 = vtanh.f32 %v383_v45 }
  0x66   :  { %v1292_v47 = vpop.eup %1291 }
  0x67   :  { %v1294_v48 = vpop.eup %1293  ;;  %v1566_v49 = vadd.f32 %v1292_v47, %v149_v46 }
  0x68   :  { %v1568_v50 = vadd.f32 %v1294_v48, %v149_v46 }
  0x69   :  { %v155_v51 = vand.u32 2139095040, %v1566_v49  ;;  %v2602_v12 = vand.u32 2147483647, %v1566_v49 }
  0x6a   :  { %v258_v52 = vand.u32 2139095040, %v1568_v50  ;;  %v1296_v63 = vpop.eup %1295  ;;  %v2600_v59 = vand.u32 2147483647, %v1568_v50 }
  0x6b   :  { %v156_v55 = vshrl.u32 %v155_v51, 23  ;;  %v1584_v16 = vadd.f32 %v1296_v63, %v387_v0  ;;  %v159_v29 = vand.u32 8388607, %v2602_v12 }
  0x6c   :  { %v259_v56 = vshrl.u32 %v258_v52, 23 }
  0x6d   :  { %v1169_v57 = vadd.s32 4294967169, %v156_v55  ;;  %v393_v37 = vand.u32 2139095040, %v1584_v16  ;;  %v160_v43 = vor.u32 8388608, %v159_v29 }
  0x6e   :  { %v1173_v58 = vadd.s32 4294967169, %v259_v56  ;;  %v597_v56 = vstv %s1596_s22 }
  0x6f   :  { %v162_v61 = vadd.s32 1, %v1169_v57  ;;  %v394_v48 = vshrl.u32 %v393_v37, 23  ;;  %v1623_v55 = vshll.u32 %v160_v43, 8  ;;  %v601_v57 = vstv %s1598_s23 }
  0x70   :  { %v265_v62 = vadd.s32 1, %v1173_v58 }
  0x71   :  { %vm163_vm0 = vcmp.gt.s32.totalorder %v162_v61, 0 }
  0x72   :  { %v164_v1 = vsel %vm163_vm0, %v162_v61, 0  ;;  %vm266_vm1 = vcmp.gt.s32.totalorder %v265_v62, 0  ;;  %v1183_v61 = vadd.s32 4294967169, %v394_v48  ;;  %v1298_v48 = vpop.eup %1297 }
  0x73   :  { %v166_v13 = vand.u32 31, %v164_v1  ;;  %v1580_v14 = vshrl.u32 %v164_v1, 5  ;;  %v267_v15 = vsel %vm266_vm1, %v265_v62, 0 }
  0x74   :  { %v269_v36 = vand.u32 31, %v267_v15  ;;  %v1632_v60 = vshrl.u32 %v267_v15, 5 }
  0x75   :  { %v167_v17 = vsub.s32 32, %v166_v13  ;;  %v169_v19 = vshll.u32 %v1437_v18, %v166_v13  ;;  %v172_v21 = vshll.u32 %v1438_v20, %v166_v13  ;;  %v175_v23 = vshll.u32 %v2607_v22, %v166_v13 }
  0x76   :  { %v178_v25 = vshll.u32 %v1440_v24, %v166_v13  ;;  %v181_v27 = vshll.u32 %v2603_v26, %v166_v13  ;;  %vm187_vm2 = vcmp.lt.s32.totalorder %v1580_v14, 4  ;;  %vm184_vm3 = vcmp.lt.s32.totalorder %v1580_v14, 1 }
  0x77   :  { %v170_v30 = vshrl.u32 %v1438_v20, %v167_v17  ;;  %v173_v31 = vshrl.u32 %v2607_v22, %v167_v17  ;;  %v176_v32 = vshrl.u32 %v1440_v24, %v167_v17  ;;  %v179_v33 = vshrl.u32 %v2603_v26, %v167_v17 }
  0x78   :  { %v182_v35 = vshrl.u32 %v1442_v34, %v167_v17  ;;  %vm186_vm4 = vcmp.lt.s32.totalorder %v1580_v14, 3  ;;  %vm185_vm5 = vcmp.lt.s32.totalorder %v1580_v14, 2  ;;  %v1617_v53 = vsub.s32 32, %v269_v36 }
  0x79   :  { %v171_v38 = vor.u32 %v170_v30, %v169_v19  ;;  %v174_v39 = vor.u32 %v173_v31, %v172_v21  ;;  %v177_v40 = vor.u32 %v176_v32, %v175_v23  ;;  %v180_v41 = vor.u32 %v179_v33, %v178_v25 }
  0x7a   :  { %v183_v42 = vor.u32 %v182_v35, %v181_v27  ;;  %v168_v62 = vshrl.u32 %v1437_v18, %v167_v17  ;;  %v281_v1 = vshll.u32 %v1440_v24, %v269_v36  ;;  %v282_v2 = vshrl.u32 %v2603_v26, %v1617_v53 }
  0x7b   :  { %v193_v46 = vsel %vm187_vm2, %v180_v41, 920167782  ;;  %v192_v51 = vsel %vm184_vm3, %v171_v38, %v174_v39  ;;  %v196_v44 = vsel %vm184_vm3, %v174_v39, %v177_v40  ;;  %v272_v5 = vshll.u32 %v1437_v18, %v269_v36 }
  0x7c   :  { %v197_v47 = vsel %vm187_vm2, %v183_v42, 1326507024  ;;  %v194_v52 = vsel %vm186_vm4, %v177_v40, %v193_v46  ;;  %v275_v13 = vshll.u32 %v1438_v20, %v269_v36  ;;  %v284_v15 = vshll.u32 %v2603_v26, %v269_v36 }
  0x7d   :  { %v198_v54 = vsel %vm186_vm4, %v180_v41, %v197_v47  ;;  %v195_v58 = vsel %vm185_vm5, %v192_v51, %v194_v52  ;;  %v285_v19 = vshrl.u32 %v1442_v34, %v1617_v53  ;;  %v273_v23 = vshrl.u32 %v1438_v20, %v1617_v53 }
  0x7e   :  { %v199_v63 = vsel %vm185_vm5, %v196_v44, %v198_v54  ;;  %v1646_v17 = vmul.u32.u64.low %v1623_v55, %v195_v58  ;;  %v1647_v21 = vmul.u32.u64.high %v1623_v55, %v195_v58, %v1646_v17  ;;  %v276_v25 = vshrl.u32 %v2607_v22, %v1617_v53 }
  0x7f   :  { %v1655_v27 = vmul.u32.u64.low %v1623_v55, %v199_v63  ;;  %v1656_v28 = vmul.u32.u64.high %v1623_v55, %v199_v63, %v1655_v27  ;;  %v278_v29 = vshll.u32 %v2607_v22, %v269_v36  ;;  %v279_v30 = vshrl.u32 %v1440_v24, %v1617_v53 }
  0x80   :  { %v189_v31 = vsel %vm187_vm2, %v177_v40, 2102212464  ;;  %v283_v32 = vor.u32 %v282_v2, %v281_v1  ;;  %v598_v33 = vmul.f32 %v1515_v3, %v597_v56  ;;  %v262_v35 = vand.u32 8388607, %v2600_v59 }
  0x81   :  { %v286_v37 = vor.u32 %v285_v19, %v284_v15  ;;  %vm290_vm6 = vcmp.lt.s32.totalorder %v1632_v60, 4  ;;  %v602_v36 = vmul.f32 %v1522_v6, %v601_v57  ;;  %v188_v41 = vsel %vm184_vm3, %v168_v62, %v171_v38 }
  0x82   :  { %v400_v42 = vadd.s32 1, %v1183_v61  ;;  %v607_v40 = vstv %s1627_s24  ;;  %v190_v43 = vsel %vm186_vm4, %v174_v39, %v189_v31  ;;  %v274_v45 = vor.u32 %v273_v23, %v272_v5 }
  0x83   :  { %v277_v46 = vor.u32 %v276_v25, %v275_v13  ;;  %v280_v47 = vor.u32 %v279_v30, %v278_v29  ;;  %vm287_vm7 = vcmp.lt.s32.totalorder %v1632_v60, 1  ;;  %vm289_vm8 = vcmp.lt.s32.totalorder %v1632_v60, 3 }
  0x84   :  { %v296_v51 = vsel %vm290_vm6, %v283_v32, 920167782  ;;  %vm401_vm9 = vcmp.gt.s32.totalorder %v400_v42, 0  ;;  %v263_v38 = vor.u32 8388608, %v262_v35  ;;  %v300_v52 = vsel %vm290_vm6, %v286_v37, 1326507024 }
  0x85   :  { %v402_v39 = vsel %vm401_vm9, %v400_v42, 0  ;;  %v604_v44 = vadd.f32 %v602_v36, %v598_v33  ;;  %v191_v54 = vsel %vm185_vm5, %v188_v41, %v190_v43  ;;  %v210_v58 = vadd.s32 1, %v1647_v21 }
  0x86   :  { %v404_v61 = vand.u32 31, %v402_v39  ;;  %v608_v62 = vmul.f32 %v1526_v8, %v607_v40  ;;  %vm209_vm10 = vc.u32 %v1656_v28, %v1646_v17  ;;  %vm288_vm11 = vcmp.lt.s32.totalorder %v1632_v60, 2 }
  0x87   :  { %v295_v63 = vsel %vm287_vm7, %v274_v45, %v277_v46  ;;  %v297_v1 = vsel %vm289_vm8, %v280_v47, %v296_v51  ;;  %v299_v14 = vsel %vm287_vm7, %v277_v46, %v280_v47  ;;  %v301_v2 = vsel %vm289_vm8, %v283_v32, %v300_v52 }
  0x88   :  { %v1704_v5 = vadd.f32 %v1298_v48, %v387_v0  ;;  %v613_v13 = vstv %s1666_s25  ;;  %v207_v15 = vmul.u32 %v1623_v55, %v191_v54  ;;  %v1708_v19 = vshll.u32 %v263_v38, 8 }
  0x89   :  { %v211_v23 = vsel %vm209_vm10, %v210_v58, %v1647_v21  ;;  %v298_v25 = vsel %vm288_vm11, %v295_v63, %v297_v1  ;;  %v1713_v27 = vsub.s32 32, %v404_v61  ;;  %v302_v29 = vsel %vm288_vm11, %v299_v14, %v301_v2 }
  0x8a   :  { %v610_v30 = vadd.f32 %v608_v62, %v604_v44  ;;  %v614_v0 = vmul.f32 %v1536_v10, %v613_v13  ;;  %v271_v31 = vshrl.u32 %v1437_v18, %v1617_v53  ;;  %v292_v55 = vsel %vm290_vm6, %v280_v47, 2102212464 }
  0x8b   :  { %v2599_v21 = vand.u32 2147483647, %v1584_v16  ;;  %v496_v32 = vand.u32 2139095040, %v1704_v5  ;;  %v212_v33 = vadd.s32 %v211_v23, %v207_v15  ;;  %v416_v36 = vshll.u32 %v1440_v24, %v404_v61 }
  0x8c   :  { %v1727_v35 = vmul.u32.u64.low %v1708_v19, %v298_v25  ;;  %v1728_v37 = vmul.u32.u64.high %v1708_v19, %v298_v25, %v1727_v35  ;;  %v1733_v41 = vmul.u32.u64.low %v1708_v19, %v302_v29  ;;  %v1734_v42 = vmul.u32.u64.high %v1708_v19, %v302_v29, %v1733_v41 }
  0x8d   :  { %v1736_v53 = vshrl.u32 %v402_v39, 5  ;;  %v417_v43 = vshrl.u32 %v2603_v26, %v1713_v27  ;;  %v407_v47 = vshll.u32 %v1437_v18, %v404_v61  ;;  %v408_v48 = vshrl.u32 %v1438_v20, %v1713_v27 }
  0x8e   :  { %v410_v51 = vshll.u32 %v1438_v20, %v404_v61  ;;  %v411_v38 = vshrl.u32 %v2607_v22, %v1713_v27  ;;  %v413_v52 = vshll.u32 %v2607_v22, %v404_v61  ;;  %v414_v39 = vshrl.u32 %v1440_v24, %v1713_v27 }
  0x8f   :  { %v419_v44 = vshll.u32 %v2603_v26, %v404_v61  ;;  %v420_v54 = vshrl.u32 %v1442_v34, %v1713_v27  ;;  %v213_v58 = vadd.s32 536870912, %v212_v33  ;;  %v418_v62 = vor.u32 %v417_v43, %v416_v36 }
  0x90   :  { %v397_v63 = vand.u32 8388607, %v2599_v21  ;;  %vm425_vm12 = vcmp.lt.s32.totalorder %v1736_v53, 4  ;;  %v291_v1 = vsel %vm287_vm7, %v271_v31, %v274_v45  ;;  %v293_v14 = vsel %vm289_vm8, %v277_v46, %v292_v55 }
  0x91   :  { %v497_v2 = vshrl.u32 %v496_v32, 23  ;;  %v616_v15 = vadd.f32 %v614_v0, %v610_v30  ;;  %v409_v61 = vor.u32 %v408_v48, %v407_v47  ;;  %v412_v23 = vor.u32 %v411_v38, %v410_v51 }
  0x92   :  { %v415_v25 = vor.u32 %v414_v39, %v413_v52  ;;  %v421_v29 = vor.u32 %v420_v54, %v419_v44  ;;  %v1761_v41 = vshrl.u32 %v213_v58, 30  ;;  %vm422_vm13 = vcmp.lt.s32.totalorder %v1736_v53, 1 }
  0x93   :  { %vm424_vm14 = vcmp.lt.s32.totalorder %v1736_v53, 3  ;;  %v431_v36 = vsel %vm425_vm12, %v418_v62, 920167782  ;;  %v294_v45 = vsel %vm288_vm11, %v291_v1, %v293_v14  ;;  %v313_v46 = vadd.s32 1, %v1728_v37 }
  0x94   :  { %v398_v30 = vor.u32 8388608, %v397_v63  ;;  %v619_v0 = vstv %s1740_s26  ;;  %vm312_vm15 = vc.u32 %v1734_v42, %v1727_v35  ;;  %vm423_vm0 = vcmp.lt.s32.totalorder %v1736_v53, 2 }
  0x95   :  { %v1187_v31 = vadd.s32 4294967169, %v497_v2  ;;  %v430_v55 = vsel %vm422_vm13, %v409_v61, %v412_v23  ;;  %v432_v32 = vsel %vm424_vm14, %v415_v25, %v431_v36  ;;  %v434_v60 = vsel %vm422_vm13, %v412_v23, %v415_v25 }
  0x96   :  { %v435_v43 = vsel %vm425_vm12, %v421_v29, 1326507024  ;;  %v215_v47 = vshll.u32 %v1761_v41, 30  ;;  %v310_v48 = vmul.u32 %v1708_v19, %v294_v45  ;;  %v620_v38 = vadd.f32 %v619_v0, %v616_v15 }
  0x97   :  { %v436_v51 = vsel %vm424_vm14, %v418_v62, %v435_v43  ;;  %v314_v52 = vsel %vm312_vm15, %v313_v46, %v1728_v37  ;;  %v1789_v39 = vshll.u32 %v398_v30, 8  ;;  %v433_v44 = vsel %vm423_vm0, %v430_v55, %v432_v32 }
  0x98   :  { %v437_v54 = vsel %vm423_vm0, %v434_v60, %v436_v51  ;;  %v503_v58 = vadd.s32 1, %v1187_v31  ;;  %v1795_v63 = vsub.s32 %v212_v33, %v215_v47  ;;  %v315_v19 = vadd.s32 %v314_v52, %v310_v48 }
  0x99   :  { %1299 = vtanh.f32 %v620_v38  ;;  %v1800_v62 = vmul.u32.u64.low %v1789_v39, %v437_v54  ;;  %v1801_v1 = vmul.u32.u64.high %v1789_v39, %v437_v54, %v1800_v62  ;;  %v406_v2 = vshrl.u32 %v1437_v18, %v1713_v27 }
  0x9a   :  { %v1804_v37 = vmul.u32.u64.low %v1789_v39, %v433_v44  ;;  %v1805_v14 = vmul.u32.u64.high %v1789_v39, %v433_v44, %v1804_v37  ;;  %vm504_vm1 = vcmp.gt.s32.totalorder %v503_v58, 0  ;;  %v427_v33 = vsel %vm425_vm12, %v415_v25, 2102212464 }
  0x9b   :  { %v505_v15 = vsel %vm504_vm1, %v503_v58, 0  ;;  %v599_v29 = vmul.f32 %v1517_v4, %v597_v56  ;;  %v603_v36 = vmul.f32 %v1524_v7, %v601_v57  ;;  %v218_v45 = vsub.s32 0, %v1795_v63 }
  0x9c   :  { %v2598_v46 = vand.u32 2147483647, %v1704_v5  ;;  %v507_v30 = vand.u32 31, %v505_v15  ;;  %v316_v31 = vadd.s32 536870912, %v315_v19  ;;  %v426_v27 = vsel %vm422_vm13, %v406_v2, %v409_v61 }
  0x9d   :  { %v428_v55 = vsel %vm424_vm14, %v412_v23, %v427_v33  ;;  %v605_v32 = vadd.f32 %v603_v36, %v599_v29  ;;  %v1170_v60 = vmin.u32 %v218_v45, %v1795_v63  ;;  %v609_v57 = vmul.f32 %v1528_v9, %v607_v40 }
  0x9e   :  { %v508_v25 = vsub.s32 32, %v507_v30  ;;  %v500_v56 = vand.u32 8388607, %v2598_v46  ;;  %v625_v43 = vstv %s1797_s27  ;;  %v1831_v47 = vshrl.u32 %v316_v31, 30 }
  0x9f   :  { %v429_v61 = vsel %vm423_vm0, %v426_v27, %v428_v55  ;;  %vm447_vm2 = vc.u32 %v1801_v1, %v1804_v37  ;;  %v448_v23 = vadd.s32 1, %v1805_v14  ;;  %v510_v51 = vshll.u32 %v1437_v18, %v507_v30 }
  0xa0   :  { %v511_v38 = vshrl.u32 %v1438_v20, %v508_v25  ;;  %v513_v52 = vshll.u32 %v1438_v20, %v507_v30  ;;  %v514_v40 = vshrl.u32 %v2607_v22, %v508_v25  ;;  %v516_v44 = vshll.u32 %v2607_v22, %v507_v30 }
  0xa1   :  { %v517_v53 = vshrl.u32 %v1440_v24, %v508_v25  ;;  %v519_v54 = vshll.u32 %v1440_v24, %v507_v30  ;;  %v520_v58 = vshrl.u32 %v2603_v26, %v508_v25  ;;  %v1846_v62 = vshrl.u32 %v505_v15, 5 }
  0xa2   :  { %v522_v2 = vshll.u32 %v2603_v26, %v507_v30  ;;  %v615_v33 = vmul.f32 %v1538_v11, %v613_v13  ;;  %v220_v29 = vclz %v1170_v60  ;;  %v318_v36 = vshll.u32 %v1831_v47, 30 }
  0xa3   :  { %v1300_v48 = vpop.eup %1299  ;;  %v445_v45 = vmul.u32 %v1789_v39, %v429_v61  ;;  %v523_v31 = vshrl.u32 %v1442_v34, %v508_v25  ;;  %v449_v15 = vsel %vm447_vm2, %v448_v23, %v1805_v14  ;;  %v501_v27 = vor.u32 8388608, %v500_v56 }
  0xa4   :  { %v611_v55 = vadd.f32 %v609_v57, %v605_v32  ;;  %v1863_v30 = vadd.f32 %v1300_v48, %v625_v43  ;;  %v512_v13 = vor.u32 %v511_v38, %v510_v51  ;;  %v515_v46 = vor.u32 %v514_v40, %v513_v52 }
  0xa5   :  { %v518_v21 = vor.u32 %v517_v53, %v516_v44  ;;  %v521_v60 = vor.u32 %v520_v58, %v519_v54  ;;  %v524_v59 = vor.u32 %v523_v31, %v522_v2  ;;  %vm525_vm3 = vcmp.lt.s32.totalorder %v1846_v62, 1 }
  0xa6   :  { %vm528_vm4 = vcmp.lt.s32.totalorder %v1846_v62, 4  ;;  %v1171_v39 = vadd.s32 4294967294, %v220_v29  ;;  %v1869_v61 = vsub.s32 %v315_v19, %v318_v36  ;;  %v450_v14 = vadd.s32 %v449_v15, %v445_v45 }
  0xa7   :  { %vm527_vm5 = vcmp.lt.s32.totalorder %v1846_v62, 3  ;;  %v1872_v32 = vshll.u32 %v501_v27, 8  ;;  %v617_v56 = vadd.f32 %v615_v33, %v611_v55  ;;  %v631_v57 = vand.u32 2139095040, %v1863_v30 }
  0xa8   :  { %vm526_vm6 = vcmp.lt.s32.totalorder %v1846_v62, 2  ;;  %v533_v23 = vsel %vm525_vm3, %v512_v13, %v515_v46  ;;  %v534_v48 = vsel %vm528_vm4, %v521_v60, 920167782  ;;  %v537_v19 = vsel %vm525_vm3, %v515_v46, %v518_v21 }
  0xa9   :  { %v535_v51 = vsel %vm527_vm5, %v518_v21, %v534_v48  ;;  %v538_v38 = vsel %vm528_vm4, %v524_v59, 1326507024  ;;  %v835_v52 = vstv %s1852_s28  ;;  %vm1172_vm7 = vcmp.lt.s32.totalorder %v1171_v39, 0 }
  0xaa   :  { %v321_v40 = vsub.s32 0, %v1869_v61  ;;  %v451_v44 = vadd.s32 536870912, %v450_v14  ;;  %v539_v53 = vsel %vm527_vm5, %v521_v60, %v538_v38  ;;  %v509_v54 = vshrl.u32 %v1437_v18, %v508_v25 }
  0xab   :  { %v536_v58 = vsel %vm526_vm6, %v533_v23, %v535_v51  ;;  %v540_v2 = vsel %vm526_vm6, %v537_v19, %v539_v53  ;;  %v632_v33 = vshrl.u32 %v631_v57, 23  ;;  %v530_v59 = vsel %vm528_vm4, %v518_v21, 2102212464 }
  0xac   :  { %v1900_v29 = vmul.u32.u64.low %v1872_v32, %v540_v2  ;;  %v1901_v36 = vmul.u32.u64.high %v1872_v32, %v540_v2, %v1900_v29  ;;  %v621_v45 = vadd.f32 %v619_v0, %v617_v56  ;;  %v1907_v25 = vsel %vm1172_vm7, 0, %v1171_v39 }
  0xad   :  { %v839_v31 = vstv %s1867_s29  ;;  %v1910_v15 = vshrl.u32 %v451_v44, 30  ;;  %v1913_v27 = vmul.u32.u64.low %v1872_v32, %v536_v58  ;;  %v1914_v55 = vmul.u32.u64.high %v1872_v32, %v536_v58, %v1913_v27 }
  0xae   :  { %v1197_v21 = vadd.s32 4294967169, %v632_v33  ;;  %v1174_v60 = vmin.u32 %v321_v40, %v1869_v61  ;;  %v529_v57 = vsel %vm525_vm3, %v509_v54, %v512_v13  ;;  %v531_v0 = vsel %vm527_vm5, %v515_v46, %v530_v59 }
  0xaf   :  { %v836_v39 = vmul.f32 %v1515_v3, %v835_v52  ;;  %1301 = vtanh.f32 %v621_v45  ;;  %v840_v23 = vmul.f32 %v1522_v6, %v839_v31  ;;  %v845_v48 = vstv %s1882_s5 }
  0xb0   :  { %v638_v56 = vadd.s32 1, %v1197_v21  ;;  %v228_v19 = vsub.s32 4294967266, %v1907_v25  ;;  %v2601_v51 = vand.u32 2147483647, %v1863_v30  ;;  %v837_v38 = vmul.f32 %v1517_v4, %v835_v52 }
  0xb1   :  { %v841_v40 = vmul.f32 %v1524_v7, %v839_v31  ;;  %v453_v13 = vshll.u32 %v1910_v15, 30  ;;  %v532_v46 = vsel %vm526_vm6, %v529_v57, %v531_v0  ;;  %v551_v3 = vadd.s32 1, %v1914_v55 }
  0xb2   :  { %vm639_vm8 = vcmp.gt.s32.totalorder %v638_v56, 0  ;;  %v323_v44 = vclz %v1174_v60  ;;  %vm550_vm9 = vc.u32 %v1901_v36, %v1913_v27  ;;  %v1936_v53 = vmul.f32 %v1526_v8, %v845_v48 }
  0xb3   :  { %v640_v6 = vsel %vm639_vm8, %v638_v56, 0  ;;  %v1938_v4 = vadd.f32 %v840_v23, %v836_v39  ;;  %v1941_v7 = vmul.f32 %v1528_v9, %v845_v48  ;;  %v851_v52 = vstv %s1905_s6 }
  0xb4   :  { %v642_v54 = vand.u32 31, %v640_v6  ;;  %v208_v62 = vadd.s32 %v1646_v17, %v1656_v28  ;;  %v224_v58 = vsub.s32 32, %v1907_v25  ;;  %v229_v2 = vadd.s32 127, %v228_v19 }
  0xb5   :  { %v548_v33 = vmul.u32 %v1872_v32, %v532_v46  ;;  %v1948_v59 = vsub.s32 %v450_v14, %v453_v13  ;;  %v552_v8 = vsel %vm550_vm9, %v551_v3, %v1914_v55  ;;  %v635_v29 = vand.u32 8388607, %v2601_v51 }
  0xb6   :  { %v643_v45 = vsub.s32 32, %v642_v54  ;;  %v1175_v31 = vadd.s32 4294967294, %v323_v44  ;;  %v645_v9 = vshll.u32 %v1437_v18, %v642_v54  ;;  %v648_v21 = vshll.u32 %v1438_v20, %v642_v54 }
  0xb7   :  { %v651_v17 = vshll.u32 %v2607_v22, %v642_v54  ;;  %v654_v32 = vshll.u32 %v1440_v24, %v642_v54  ;;  %v1960_v55 = vadd.s32 %v552_v8, %v548_v33  ;;  %v641_v57 = vshrl.u32 %v640_v6, 5 }
  0xb8   :  { %v646_v28 = vshrl.u32 %v1438_v20, %v643_v45  ;;  %v649_v60 = vshrl.u32 %v2607_v22, %v643_v45  ;;  %v652_v14 = vshrl.u32 %v1440_v24, %v643_v45  ;;  %v655_v0 = vshrl.u32 %v2603_v26, %v643_v45 }
  0xb9   :  { %v657_v39 = vshll.u32 %v2603_v26, %v642_v54  ;;  %v1302_v56 = vpop.eup %1301  ;;  %v456_v23 = vsub.s32 0, %v1948_v59  ;;  %v636_v48 = vor.u32 8388608, %v635_v29  ;;  %v658_v19 = vshrl.u32 %v1442_v34, %v643_v45 }
  0xba   :  { %v843_v13 = vadd.f32 %v841_v40, %v837_v38  ;;  %v225_v46 = vshll.u32 %v1795_v63, %v1907_v25  ;;  %v226_v3 = vshrl.u32 %v208_v62, %v224_v58  ;;  %vm1176_vm10 = vcmp.lt.s32.totalorder %v1175_v31, 0 }
  0xbb   :  { %v647_v44 = vor.u32 %v646_v28, %v645_v9  ;;  %v650_v33 = vor.u32 %v649_v60, %v648_v21  ;;  %v653_v6 = vor.u32 %v652_v14, %v651_v17  ;;  %v656_v8 = vor.u32 %v655_v0, %v654_v32 }
  0xbc   :  { %v659_v51 = vor.u32 %v658_v19, %v657_v39  ;;  %v230_v12 = vshll.u32 %v229_v2, 23  ;;  %v554_v54 = vadd.s32 536870912, %v1960_v55  ;;  %v1971_v26 = vadd.f32 %v1302_v56, %v625_v43 }
  0xbd   :  { %vm660_vm11 = vcmp.lt.s32.totalorder %v641_v57, 1  ;;  %v1975_v38 = vsel %vm1176_vm10, 0, %v1175_v31  ;;  %v1184_v63 = vmin.u32 %v456_v23, %v1948_v59  ;;  %vm663_vm12 = vcmp.lt.s32.totalorder %v641_v57, 4 }
  0xbe   :  { %v676_v25 = vshll.u32 %v636_v48, 8  ;;  %v644_v40 = vshrl.u32 %v1437_v18, %v643_v45  ;;  %vm661_vm13 = vcmp.lt.s32.totalorder %v641_v57, 2  ;;  %vm662_vm14 = vcmp.lt.s32.totalorder %v641_v57, 3 }
  0xbf   :  { %v665_v62 = vsel %vm663_vm12, %v653_v6, 2102212464  ;;  %v668_v58 = vsel %vm660_vm11, %v647_v44, %v650_v33  ;;  %v669_v43 = vsel %vm663_vm12, %v656_v8, 920167782  ;;  %v672_v2 = vsel %vm660_vm11, %v650_v33, %v653_v6 }
  0xc0   :  { %v673_v29 = vsel %vm663_vm12, %v659_v51, 1326507024  ;;  %v227_v9 = vor.u32 %v226_v3, %v225_v46  ;;  %v231_v31 = vor.u32 4788187, %v230_v12  ;;  %v331_v21 = vsub.s32 4294967266, %v1975_v38 }
  0xc1   :  { %v1984_v17 = vshrl.u32 %v554_v54, 30  ;;  %v458_v28 = vclz %v1184_v63  ;;  %v670_v45 = vsel %vm662_vm14, %v653_v6, %v669_v43  ;;  %v674_v60 = vsel %vm662_vm14, %v656_v8, %v673_v29 }
  0xc2   :  { %v734_v14 = vand.u32 2139095040, %v1971_v26  ;;  %v664_v32 = vsel %vm660_vm11, %v644_v40, %v647_v44  ;;  %v666_v0 = vsel %vm662_vm14, %v650_v33, %v665_v62  ;;  %v671_v51 = vsel %vm661_vm13, %v668_v58, %v670_v45 }
  0xc3   :  { %v675_v12 = vsel %vm661_vm13, %v672_v2, %v674_v60  ;;  %v1993_v23 = vmul.u32.u64.low %v676_v25, %v671_v51  ;;  %v1994_v48 = vmul.u32.u64.high %v676_v25, %v671_v51, %v1993_v23  ;;  %v556_v19 = vshll.u32 %v1984_v17, 30 }
  0xc4   :  { %v1990_v39 = vmul.u32.u64.low %v676_v25, %v675_v12  ;;  %v1991_v56 = vmul.u32.u64.high %v676_v25, %v675_v12, %v1990_v39  ;;  %v735_v46 = vshrl.u32 %v734_v14, 23  ;;  %v848_v3 = vadd.f32 %v1936_v53, %v1938_v4 }
  0xc5   :  { %v852_v44 = vmul.f32 %v1536_v10, %v851_v52  ;;  %v667_v33 = vsel %vm661_vm13, %v664_v32, %v666_v0  ;;  %v853_v6 = vmul.f32 %v1538_v11, %v851_v52  ;;  %v857_v8 = vstv %s1973_s30 }
  0xc6   :  { %v863_v54 = vstv %s1978_s9  ;;  %v232_v63 = vand.u32 2147483647, %v231_v31  ;;  %v234_v40 = vcvt.s32.f32 %v227_v9  ;;  %v1185_v62 = vadd.s32 4294967294, %v458_v28 }
  0xc7   :  { %v1201_v58 = vadd.s32 4294967169, %v735_v46  ;;  %v311_v43 = vadd.s32 %v1727_v35, %v1734_v42  ;;  %v327_v2 = vsub.s32 32, %v1975_v38  ;;  %v332_v53 = vadd.s32 127, %v331_v21 }
  0xc8   :  { %v849_v4 = vadd.f32 %v1941_v7, %v843_v13  ;;  %v2014_v10 = vsub.s32 %v1960_v55, %v556_v19  ;;  %v683_v57 = vmul.u32 %v676_v25, %v667_v33  ;;  %vm685_vm15 = vc.u32 %v1991_v56, %v1993_v23 }
  0xc9   :  { %v854_v11 = vadd.f32 %v852_v44, %v848_v3  ;;  %vm154_vm0 = vcmp.lt.s32.totalorder %v1566_v49, 0  ;;  %v238_v52 = vsub.s32 4, %v1761_v41  ;;  %v686_v35 = vadd.s32 1, %v1994_v48 }
  0xca   :  { %v741_v42 = vadd.s32 1, %v1201_v58  ;;  %v2021_v29 = vmul.f32 %v234_v40, %v232_v63  ;;  %v328_v7 = vshll.u32 %v1869_v61, %v1975_v38  ;;  %v341_v55 = vsub.s32 4, %v1831_v47 }
  0xcb   :  { %vm1186_vm1 = vcmp.lt.s32.totalorder %v1185_v62, 0  ;;  %v329_v13 = vshrl.u32 %v311_v43, %v327_v2  ;;  %v333_v25 = vshll.u32 %v332_v53, 23  ;;  %v687_v9 = vsel %vm685_vm15, %v686_v35, %v1994_v48 }
  0xcc   :  { %vm742_vm2 = vcmp.gt.s32.totalorder %v741_v42, 0  ;;  %vm257_vm3 = vcmp.lt.s32.totalorder %v1568_v50, 0  ;;  %v559_v31 = vsub.s32 0, %v2014_v10  ;;  %v688_v21 = vadd.s32 %v687_v9, %v683_v57 }
  0xcd   :  { %v858_v28 = vadd.f32 %v857_v8, %v854_v11  ;;  %v2031_v45 = vsel %vm1186_vm1, 0, %v1185_v62  ;;  %v2606_v60 = vand.u32 2147483647, %v1971_v26  ;;  %v743_v61 = vsel %vm742_vm2, %v741_v42, 0 }
  0xce   :  { %v855_v38 = vadd.f32 %v853_v6, %v849_v4  ;;  %v2037_v14 = vsel %vm154_vm0, %v238_v52, %v1761_v41  ;;  %v2042_v32 = vsel %vm257_vm3, %v341_v55, %v1831_v47  ;;  %v446_v0 = vadd.s32 %v1804_v37, %v1801_v1 }
  0xcf   :  { %v689_v51 = vadd.s32 536870912, %v688_v21  ;;  %v236_v12 = vxor.u32 2147483648, %v2021_v29  ;;  %v2047_v39 = vor.u32 %v329_v13, %v328_v7  ;;  %v2049_v48 = vor.u32 4788187, %v333_v25 }
  0xd0   :  { %v745_v19 = vand.u32 31, %v743_v61  ;;  %v466_v46 = vsub.s32 4294967266, %v2031_v45  ;;  %v1188_v41 = vmin.u32 %v559_v31, %v2014_v10  ;;  %1303 = vtanh.f32 %v858_v28 }
  0xd1   :  { %v2053_v3 = vshrl.u32 %v689_v51, 30  ;;  %v462_v47 = vsub.s32 32, %v2031_v45  ;;  %v738_v1 = vand.u32 8388607, %v2606_v60  ;;  %v744_v37 = vshrl.u32 %v743_v61, 5 }
  0xd2   :  { %v746_v44 = vsub.s32 32, %v745_v19  ;;  %v748_v6 = vshll.u32 %v1437_v18, %v745_v19  ;;  %v751_v63 = vshll.u32 %v1438_v20, %v745_v19  ;;  %v754_v40 = vshll.u32 %v2607_v22, %v745_v19 }
  0xd3   :  { %v691_v33 = vshll.u32 %v2053_v3, 30  ;;  %v757_v2 = vshll.u32 %v1440_v24, %v745_v19  ;;  %v467_v53 = vadd.s32 127, %v466_v46  ;;  %v561_v4 = vclz %v1188_v41 }
  0xd4   :  { %v749_v62 = vshrl.u32 %v1438_v20, %v746_v44  ;;  %v752_v58 = vshrl.u32 %v2607_v22, %v746_v44  ;;  %v755_v43 = vshrl.u32 %v1440_v24, %v746_v44  ;;  %v2609_v11 = vmov 920167782  }
  0xd5   :  { %v2066_v57 = vsub.s32 %v688_v21, %v691_v33  ;;  %v758_v52 = vshrl.u32 %v2609_v11, %v746_v44  ;;  %v337_v35 = vcvt.s32.f32 %v2047_v39  ;;  %v463_v42 = vshll.u32 %v1948_v59, %v2031_v45 }
  0xd6   :  { %v739_v7 = vor.u32 8388608, %v738_v1  ;;  %v859_v55 = vadd.f32 %v857_v8, %v855_v38  ;;  %v750_v13 = vor.u32 %v749_v62, %v748_v6  ;;  %v753_v25 = vor.u32 %v752_v58, %v751_v63 }
  0xd7   :  { %v756_v9 = vor.u32 %v755_v43, %v754_v40  ;;  %vm763_vm4 = vcmp.lt.s32.totalorder %v744_v37, 1  ;;  %v694_v31 = vsub.s32 0, %v2066_v57  ;;  %v759_v28 = vor.u32 %v758_v52, %v757_v2 }
  0xd8   :  { %v760_v21 = vshll.u32 %v2609_v11, %v745_v19  ;;  %v761_v61 = vshrl.u32 %v1442_v34, %v746_v44  ;;  %v464_v51 = vshrl.u32 %v446_v0, %v462_v47  ;;  %v468_v46 = vshll.u32 %v467_v53, 23 }
  0xd9   :  { %v1189_v39 = vadd.s32 4294967294, %v561_v4  ;;  %v747_v41 = vshrl.u32 %v1437_v18, %v746_v44  ;;  %vm765_vm5 = vcmp.lt.s32.totalorder %v744_v37, 3  ;;  %vm766_vm6 = vcmp.lt.s32.totalorder %v744_v37, 4 }
  0xda   :  { %v762_v59 = vor.u32 %v761_v61, %v760_v21  ;;  %v779_v8 = vshll.u32 %v739_v7, 8  ;;  %v1304_v45 = vpop.eup %1303  ;;  %vm764_vm7 = vcmp.lt.s32.totalorder %v744_v37, 2  ;;  %v768_v38 = vsel %vm766_vm6, %v756_v9, 2102212464 }
  0xdb   :  { %v771_v1 = vsel %vm763_vm4, %v750_v13, %v753_v25  ;;  %1305 = vtanh.f32 %v859_v55  ;;  %v1198_v19 = vmin.u32 %v694_v31, %v2066_v57  ;;  %v772_v33 = vsel %vm766_vm6, %v759_v28, 920167782 }
  0xdc   :  { %v775_v0 = vsel %vm763_vm4, %v753_v25, %v756_v9  ;;  %v776_v47 = vsel %vm766_vm6, %v762_v59, 1326507024  ;;  %v767_v6 = vsel %vm763_vm4, %v747_v41, %v750_v13  ;;  %v769_v44 = vsel %vm765_vm5, %v753_v25, %v768_v38 }
  0xdd   :  { %v773_v63 = vsel %vm765_vm5, %v756_v9, %v772_v33  ;;  %v777_v40 = vsel %vm765_vm5, %v759_v28, %v776_v47  ;;  %v335_v62 = vand.u32 2147483647, %v2049_v48  ;;  %v2087_v2 = vadd.f32 %v1304_v45, %v863_v54 }
  0xde   :  { %v774_v58 = vsel %vm764_vm7, %v771_v1, %v773_v63  ;;  %v778_v43 = vsel %vm764_vm7, %v775_v0, %v777_v40  ;;  %v465_v53 = vor.u32 %v464_v51, %v463_v42  ;;  %v469_v4 = vor.u32 4788187, %v468_v46 }
  0xdf   :  { %v2089_v52 = vmul.u32.u64.low %v779_v8, %v778_v43  ;;  %v2090_v7 = vmul.u32.u64.high %v779_v8, %v778_v43, %v2089_v52  ;;  %vm1190_vm8 = vcmp.lt.s32.totalorder %v1189_v39, 0  ;;  %v770_v55 = vsel %vm764_vm7, %v767_v6, %v769_v44 }
  0xe0   :  { %v2093_v13 = vmul.u32.u64.low %v779_v8, %v774_v58  ;;  %v2094_v25 = vmul.u32.u64.high %v779_v8, %v774_v58, %v2093_v13  ;;  %v2610_v48 = vand.u32 2147483647, %v1566_v49  ;;  %v2613_v31 = vand.u32 2147483647, %v1568_v50 }
  0xe1   :  { %v696_v28 = vclz %v1198_v19  ;;  %v237_v37 = vsel %vm154_vm0, %v236_v12, %v2021_v29  ;;  %v869_v51 = vand.u32 2139095040, %v2087_v2  ;;  %v338_v46 = vmul.f32 %v337_v35, %v335_v62 }
  0xe2   :  { %vm2099_vm9 = vcmp.le.f32.partialorder %v2610_v48, 0.7853982  ;;  %vm2105_vm10 = vcmp.le.f32.partialorder %v2613_v31, 0.7853982  ;;  %v2121_v41 = vsel %vm1190_vm8, 0, %v1189_v39  ;;  %v786_v59 = vmul.u32 %v779_v8, %v770_v55 }
  0xe3   :  { %v241_v21 = vsel %vm2099_vm9, 0, %v2037_v14  ;;  %v344_v61 = vsel %vm2105_vm10, 0, %v2042_v32  ;;  %vm788_vm11 = vc.u32 %v2090_v7, %v2093_v13  ;;  %v470_v45 = vand.u32 2147483647, %v469_v4 }
  0xe4   :  { %v472_v38 = vcvt.s32.f32 %v465_v53  ;;  %v789_v29 = vadd.s32 1, %v2094_v25  ;;  %v870_v12 = vshrl.u32 %v869_v51, 23  ;;  %v240_v14 = vsel %vm2099_vm9, %v1566_v49, %v237_v37 }
  0xe5   :  { %v1306_v1 = vpop.eup %1305  ;;  %vm392_vm12 = vcmp.lt.s32.totalorder %v1584_v16, 0  ;;  %v1199_v32 = vadd.s32 4294967294, %v696_v28  ;;  %v2130_v35 = vand.u32 3, %v241_v21  ;;  %v569_v39 = vsub.s32 4294967266, %v2121_v41 }
  0xe6   :  { %v790_v8 = vsel %vm788_vm11, %v789_v29, %v2094_v25  ;;  %v1211_v19 = vadd.s32 4294967169, %v870_v12  ;;  %v2134_v33 = vand.u32 3, %v344_v61  ;;  %v476_v0 = vsub.s32 4, %v1910_v15 }
  0xe7   :  { %v791_v47 = vadd.s32 %v790_v8, %v786_v59  ;;  %v2605_v6 = vand.u32 2147483647, %v2087_v2  ;;  %1307 = vcosq.f32 %v240_v14  ;;  %v339_v44 = vxor.u32 2147483648, %v338_v46 }
  0xe8   :  { %v2138_v63 = vmul.f32 %v472_v38, %v470_v45  ;;  %v876_v40 = vadd.s32 1, %v1211_v19  ;;  %1309 = vsinq.f32 %v240_v14  ;;  %vm1200_vm13 = vcmp.lt.s32.totalorder %v1199_v32, 0 }
  0xe9   :  { %v792_v62 = vadd.s32 536870912, %v791_v47  ;;  %v2142_v58 = vadd.f32 %v1306_v1, %v863_v54  ;;  %v549_v43 = vadd.s32 %v1913_v27, %v1901_v36  ;;  %v565_v53 = vsub.s32 32, %v2121_v41 }
  0xea   :  { %v2147_v4 = vadd.s32 127, %v569_v39  ;;  %vm877_vm14 = vcmp.gt.s32.totalorder %v876_v40, 0  ;;  %v2152_v52 = vsel %vm392_vm12, %v476_v0, %v1910_v15  ;;  %v873_v25 = vand.u32 8388607, %v2605_v6 }
  0xeb   :  { %v2154_v55 = vshrl.u32 %v792_v62, 30  ;;  %v878_v54 = vsel %vm877_vm14, %v876_v40, 0  ;;  %v2160_v48 = vsel %vm257_vm3, %v339_v44, %v338_v46  ;;  %v474_v36 = vxor.u32 2147483648, %v2138_v63 }
  0xec   :  { %v2163_v27 = vsel %vm1200_vm13, 0, %v1199_v32  ;;  %v880_v9 = vand.u32 31, %v878_v54  ;;  %v566_v31 = vshll.u32 %v2014_v10, %v2121_v41  ;;  %v684_v15 = vadd.s32 %v1993_v23, %v1991_v56 }
  0xed   :  { %v794_v28 = vshll.u32 %v2154_v55, 30  ;;  %v972_v37 = vand.u32 2139095040, %v2142_v58  ;;  %v567_v21 = vshrl.u32 %v549_v43, %v565_v53  ;;  %v571_v61 = vshll.u32 %v2147_v4, 23 }
  0xee   :  { %v881_v51 = vsub.s32 32, %v880_v9  ;;  %v883_v46 = vshll.u32 %v1437_v18, %v880_v9  ;;  %v700_v59 = vsub.s32 32, %v2163_v27  ;;  %v704_v45 = vsub.s32 4294967266, %v2163_v27 }
  0xef   :  { %v2175_v38 = vsub.s32 %v791_v47, %v794_v28  ;;  %v874_v29 = vor.u32 8388608, %v873_v25  ;;  %v886_v56 = vshll.u32 %v1438_v20, %v880_v9  ;;  %v889_v23 = vshll.u32 %v2607_v22, %v880_v9 }
  0xf0   :  { %v884_v12 = vshrl.u32 %v1438_v20, %v881_v51  ;;  %v892_v1 = vshll.u32 %v1440_v24, %v880_v9  ;;  %v2616_v14 = vand.u32 2147483647, %v1584_v16  ;;  %v879_v8 = vshrl.u32 %v878_v54, 5 }
  0xf1   :  { %v797_v39 = vsub.s32 0, %v2175_v38  ;;  %v887_v19 = vshrl.u32 %v2607_v22, %v881_v51  ;;  %v973_v0 = vshrl.u32 %v972_v37, 23  ;;  %v2189_v47 = vpop.eup %1307  ;;  %v701_v44 = vshll.u32 %v2066_v57, %v2163_v27 }
  0xf2   :  { %vm2183_vm15 = vcmp.le.f32.partialorder %v2616_v14, 0.7853982  ;;  %v885_v40 = vor.u32 %v884_v12, %v883_v46  ;;  %v890_v62 = vshrl.u32 %v1440_v24, %v881_v51  ;;  %v893_v43 = vshrl.u32 %v2609_v11, %v881_v51  ;;  %v2195_v53 = vpop.eup %1309 }
  0xf3   :  { %v702_v4 = vshrl.u32 %v684_v15, %v700_v59  ;;  %v705_v25 = vadd.s32 127, %v704_v45  ;;  %v1202_v28 = vmin.u32 %v797_v39, %v2175_v38  ;;  %v882_v54 = vshrl.u32 %v1437_v18, %v881_v51 }
  0xf4   :  { %v888_v14 = vor.u32 %v887_v19, %v886_v56  ;;  %v891_v37 = vor.u32 %v890_v62, %v889_v23  ;;  %v894_v6 = vor.u32 %v893_v43, %v892_v1  ;;  %v895_v60 = vshll.u32 %v2609_v11, %v880_v9 }
  0xf5   :  { %v896_v57 = vshrl.u32 %v1442_v34, %v881_v51  ;;  %vm898_vm0 = vcmp.lt.s32.totalorder %v879_v8, 1  ;;  %v914_v27 = vshll.u32 %v874_v29, 8  ;;  %v1215_v46 = vadd.s32 4294967169, %v973_v0 }
  0xf6   :  { %vm899_vm1 = vcmp.lt.s32.totalorder %v879_v8, 2  ;;  %vm900_vm2 = vcmp.lt.s32.totalorder %v879_v8, 3  ;;  %vm901_vm3 = vcmp.lt.s32.totalorder %v879_v8, 4  ;;  %v906_v12 = vsel %vm898_vm0, %v885_v40, %v888_v14 }
  0xf7   :  { %v799_v15 = vclz %v1202_v28  ;;  %v897_v59 = vor.u32 %v896_v57, %v895_v60  ;;  %v903_v45 = vsel %vm901_vm3, %v891_v37, 2102212464  ;;  %v907_v39 = vsel %vm901_vm3, %v894_v6, 920167782 }
  0xf8   :  { %v902_v22 = vsel %vm898_vm0, %v882_v54, %v885_v40  ;;  %v904_v56 = vsel %vm900_vm2, %v888_v14, %v903_v45  ;;  %v908_v23 = vsel %vm900_vm2, %v891_v37, %v907_v39  ;;  %v910_v1 = vsel %vm898_vm0, %v888_v14, %v891_v37 }
  0xf9   :  { %v706_v9 = vshll.u32 %v705_v25, 23  ;;  %v909_v51 = vsel %vm899_vm1, %v906_v12, %v908_v23  ;;  %v911_v19 = vsel %vm901_vm3, %v897_v59, 1326507024  ;;  %v979_v29 = vadd.s32 1, %v1215_v46 }
  0xfa   :  { %v479_v0 = vsel %vm2183_vm15, 0, %v2152_v52  ;;  %v912_v62 = vsel %vm900_vm2, %v894_v6, %v911_v19  ;;  %v2208_v60 = vmul.u32.u64.low %v914_v27, %v909_v51  ;;  %v2209_v43 = vmul.u32.u64.high %v914_v27, %v909_v51, %v2208_v60 }
  0xfb   :  { %v2216_v40 = vsel %vm2105_vm10, %v1568_v50, %v2160_v48  ;;  %v1203_v25 = vadd.s32 4294967294, %v799_v15  ;;  %v905_v28 = vsel %vm899_vm1, %v902_v22, %v904_v56  ;;  %v913_v54 = vsel %vm899_vm1, %v910_v1, %v912_v62 }
  0xfc   :  { %v475_v6 = vsel %vm392_vm12, %v474_v36, %v2138_v63  ;;  %v568_v52 = vor.u32 %v567_v21, %v566_v31  ;;  %v2228_v14 = vmul.u32.u64.low %v914_v27, %v913_v54  ;;  %v2229_v37 = vmul.u32.u64.high %v914_v27, %v913_v54, %v2228_v14 }
  0xfd   :  { %v572_v42 = vor.u32 4788187, %v571_v61  ;;  %v703_v48 = vor.u32 %v702_v4, %v701_v44  ;;  %v707_v57 = vor.u32 4788187, %v706_v9  ;;  %vm980_vm4 = vcmp.gt.s32.totalorder %v979_v29, 0 }
  0xfe   :  { %v921_v22 = vmul.u32 %v914_v27, %v905_v28  ;;  %v924_v8 = vadd.s32 1, %v2209_v43  ;;  %v969_v46 = vand.u32 2147483647, %v2142_v58  ;;  %v981_v12 = vsel %vm980_vm4, %v979_v29, 0 }
  0xff   :  { %v251_v15 = vxor.u32 2147483648, %v2189_v47  ;;  %1311 = vcosq.f32 %v2216_v40  ;;  %v2235_v63 = vand.u32 3, %v479_v0  ;;  %vm1204_vm5 = vcmp.lt.s32.totalorder %v1203_v25, 0 }
 0x100   :  { %v478_v10 = vsel %vm2183_vm15, %v1584_v16, %v475_v6  ;;  %v575_v41 = vcvt.s32.f32 %v568_v52  ;;  %vm923_vm6 = vc.u32 %v2229_v37, %v2208_v60  ;;  %v983_v36 = vand.u32 31, %v981_v12 }
 0x101   :  { %v573_v31 = vand.u32 2147483647, %v572_v42  ;;  %v708_v21 = vand.u32 2147483647, %v707_v57  ;;  %v710_v61 = vcvt.s32.f32 %v703_v48  ;;  %v925_v44 = vsel %vm923_vm6, %v924_v8, %v2209_v43 }
 0x102   :  { %v2243_v4 = vsel %vm1204_vm5, 0, %v1203_v25  ;;  %v926_v27 = vadd.s32 %v925_v44, %v921_v22  ;;  %v976_v59 = vand.u32 8388607, %v969_v46  ;;  %v984_v45 = vsub.s32 32, %v983_v36 }
 0x103   :  { %vm630_vm7 = vcmp.lt.s32.totalorder %v1863_v30, 0  ;;  %v2248_v32 = vshrl.u32 %v981_v12, 5  ;;  %v986_v39 = vshll.u32 %v1437_v18, %v983_v36  ;;  %v989_v56 = vshll.u32 %v1438_v20, %v983_v36 }
 0x104   :  { %v995_v23 = vshll.u32 %v1440_v24, %v983_v36  ;;  %v927_v1 = vadd.s32 536870912, %v926_v27  ;;  %v987_v9 = vshrl.u32 %v1438_v20, %v984_v45  ;;  %v2619_v51 = vmov 2131351028  }
 0x105   :  { %v990_v19 = vshrl.u32 %v2619_v51, %v984_v45  ;;  %v992_v29 = vshll.u32 %v2619_v51, %v983_v36  ;;  %v993_v0 = vshrl.u32 %v1440_v24, %v984_v45  ;;  %v996_v62 = vshrl.u32 %v2609_v11, %v984_v45 }
 0x106   :  { %v998_v43 = vshll.u32 %v2609_v11, %v983_v36  ;;  %v999_v25 = vshrl.u32 %v1442_v34, %v984_v45  ;;  %v248_v28 = vxor.u32 2147483648, %v2195_v53  ;;  %1313 = vcosq.f32 %v478_v10 }
 0x107   :  { %v711_v54 = vmul.f32 %v710_v61, %v708_v21  ;;  %v2261_v6 = vshrl.u32 %v927_v1, 30  ;;  %1315 = vsinq.f32 %v478_v10  ;;  %v2263_v20 = vmul.f32 %v575_v41, %v573_v31 }
 0x108   :  { %v977_v52 = vor.u32 8388608, %v976_v59  ;;  %v997_v14 = vor.u32 %v996_v62, %v995_v23  ;;  %vm247_vm8 = vcmp.eq.s32.totalorder %v2130_v35, 0  ;;  %vm250_vm9 = vcmp.eq.s32.totalorder %v2130_v35, 2 }
 0x109   :  { %v2620_v24 = vand.u32 2147483647, %v1863_v30  ;;  %v807_v34 = vsub.s32 4294967266, %v2243_v4  ;;  %v929_v42 = vshll.u32 %v2261_v6, 30  ;;  %v988_v48 = vor.u32 %v987_v9, %v986_v39  ;;  %v2275_v22 = vpop.eup %1311 }
 0x10a   :  { %v991_v57 = vor.u32 %v990_v19, %v989_v56  ;;  %v994_v8 = vor.u32 %v993_v0, %v992_v29  ;;  %v1000_v12 = vor.u32 %v999_v25, %v998_v43  ;;  %vm1001_vm11 = vcmp.lt.s32.totalorder %v2248_v32, 1 }
 0x10b   :  { %vm2269_vm10 = vcmp.le.f32.partialorder %v2620_v24, 0.7853982  ;;  %vm1004_vm12 = vcmp.lt.s32.totalorder %v2248_v32, 4  ;;  %v712_v10 = vxor.u32 2147483648, %v711_v54  ;;  %v2279_v41 = vsub.s32 %v926_v27, %v929_v42 }
 0x10c   :  { %v985_v36 = vshrl.u32 %v1437_v18, %v984_v45  ;;  %vm1003_vm13 = vcmp.lt.s32.totalorder %v2248_v32, 3  ;;  %v787_v31 = vadd.s32 %v2093_v13, %v2090_v7  ;;  %v803_v21 = vsub.s32 32, %v2243_v4 }
 0x10d   :  { %v1006_v61 = vsel %vm1004_vm12, %v994_v8, 2102212464  ;;  %v1010_v44 = vsel %vm1004_vm12, %v997_v14, 920167782  ;;  %vm246_vm14 = vcmp.lt.s32.totalorder %v2130_v35, 2  ;;  %v932_v27 = vsub.s32 0, %v2279_v41 }
 0x10e   :  { %vm1002_vm15 = vcmp.lt.s32.totalorder %v2248_v32, 2  ;;  %v1009_v18 = vsel %vm1001_vm11, %v988_v48, %v991_v57  ;;  %v1017_v59 = vshll.u32 %v977_v52, 8  ;;  %v808_v45 = vadd.s32 127, %v807_v34 }
 0x10f   :  { %v1011_v7 = vsel %vm1003_vm13, %v994_v8, %v1010_v44  ;;  %v1013_v13 = vsel %vm1001_vm11, %v991_v57, %v994_v8  ;;  %v1014_v39 = vsel %vm1004_vm12, %v1000_v12, 1326507024  ;;  %v713_v56 = vsel %vm630_vm7, %v712_v10, %v711_v54 }
 0x110   :  { %v1212_v23 = vmin.u32 %v932_v27, %v2279_v41  ;;  %v1005_v1 = vsel %vm1001_vm11, %v985_v36, %v988_v48  ;;  %v1007_v9 = vsel %vm1003_vm13, %v991_v57, %v1006_v61  ;;  %vm495_vm0 = vcmp.lt.s32.totalorder %v1704_v5, 0  ;;  %v1314_v62 = vpop.eup %1313 }
 0x111   :  { %v804_v51 = vshll.u32 %v2175_v38, %v2243_v4  ;;  %v805_v19 = vshrl.u32 %v787_v31, %v803_v21  ;;  %v1012_v29 = vsel %vm1002_vm15, %v1009_v18, %v1011_v7  ;;  %v1015_v0 = vsel %vm1003_vm13, %v997_v14, %v1014_v39  ;;  %v1316_v24 = vpop.eup %1315 }
 0x112   :  { %vm244_vm1 = vweird.f32 %v1566_v49  ;;  %v934_v43 = vclz %v1212_v23  ;;  %v1016_v25 = vsel %vm1002_vm15, %v1013_v13, %v1015_v0  ;;  %v809_v38 = vshll.u32 %v808_v45, 23 }
 0x113   :  { %v2318_v54 = vmul.u32.u64.low %v1017_v59, %v1012_v29  ;;  %v2319_v52 = vmul.u32.u64.high %v1017_v59, %v1012_v29, %v2318_v54  ;;  %v1008_v4 = vsel %vm1002_vm15, %v1005_v1, %v1007_v9  ;;  %1317 = vsinq.f32 %v2216_v40 }
 0x114   :  { %v2324_v34 = vmul.u32.u64.low %v1017_v59, %v1016_v25  ;;  %v2325_v42 = vmul.u32.u64.high %v1017_v59, %v1016_v25, %v2324_v34  ;;  %vm485_vm2 = vcmp.eq.s32.totalorder %v2235_v63, 0  ;;  %vm488_vm3 = vcmp.eq.s32.totalorder %v2235_v63, 2 }
 0x115   :  { %v2623_v14 = vand.u32 2147483647, %v1704_v5  ;;  %v1213_v57 = vadd.s32 4294967294, %v934_v43  ;;  %v249_v32 = vsel %vm247_vm8, %v2189_v47, %v248_v28  ;;  %v252_v40 = vsel %vm250_vm9, %v251_v15, %v2195_v53 }
 0x116   :  { %v577_v8 = vxor.u32 2147483648, %v2263_v20  ;;  %v716_v12 = vsel %vm2269_vm10, %v1863_v30, %v713_v56  ;;  %v922_v10 = vadd.s32 %v2208_v60, %v2229_v37  ;;  %v1024_v36 = vmul.u32 %v1017_v59, %v1008_v4 }
 0x117   :  { %vm2332_vm4 = vcmp.le.f32.partialorder %v2623_v14, 0.7853982  ;;  %vm1214_vm5 = vcmp.lt.s32.totalorder %v1213_v57, 0  ;;  %v1027_v31 = vadd.s32 1, %v2319_v52  ;;  %v806_v28 = vor.u32 %v805_v19, %v804_v51 }
 0x118   :  { %v810_v21 = vor.u32 4788187, %v809_v38  ;;  %v937_v61 = vsel %vm1214_vm5, 0, %v1213_v57  ;;  %vm1026_vm6 = vc.u32 %v2325_v42, %v2318_v54  ;;  %1319 = vcosq.f32 %v716_v12 }
 0x119   :  { %v938_v47 = vsub.s32 32, %v937_v61  ;;  %v939_v53 = vshll.u32 %v2279_v41, %v937_v61  ;;  %v942_v15 = vsub.s32 4294967266, %v937_v61  ;;  %v253_v44 = vsel %vm246_vm14, %v249_v32, %v252_v40 }
 0x11a   :  { %v714_v60 = vsub.s32 4, %v2053_v3  ;;  %1321 = vsinq.f32 %v716_v12  ;;  %v1028_v37 = vsel %vm1026_vm6, %v1027_v31, %v2319_v52  ;;  %v579_v27 = vsub.s32 4, %v1984_v17 }
 0x11b   :  { %v940_v18 = vshrl.u32 %v922_v10, %v938_v47  ;;  %v943_v59 = vadd.s32 127, %v942_v15  ;;  %v1029_v45 = vadd.s32 %v1028_v37, %v1024_v36  ;;  %v486_v7 = vxor.u32 2147483648, %v1316_v24 }
 0x11c   :  { %v489_v13 = vxor.u32 2147483648, %v1314_v62  ;;  %v811_v39 = vand.u32 2147483647, %v810_v21  ;;  %v813_v56 = vcvt.s32.f32 %v806_v28  ;;  %v578_v41 = vsel %vm495_vm0, %v577_v8, %v2263_v20 }
 0x11d   :  { %v941_v35 = vor.u32 %v940_v18, %v939_v53  ;;  %v944_v23 = vshll.u32 %v943_v59, 23  ;;  %v1030_v1 = vadd.s32 536870912, %v1029_v45  ;;  %v2364_v9 = vsel %vm244_vm1, nan, %v253_v44  ;;  %v2372_v19 = vpop.eup %1317 }
 0x11e   :  { %vm484_vm8 = vcmp.lt.s32.totalorder %v2235_v63, 2  ;;  %v715_v51 = vsel %vm630_vm7, %v714_v60, %v2053_v3  ;;  %vm353_vm9 = vcmp.eq.s32.totalorder %v2134_v33, 2  ;;  %v580_v20 = vsel %vm495_vm0, %v579_v27, %v1984_v17 }
 0x11f   :  { %v945_v29 = vor.u32 4788187, %v944_v23  ;;  %v948_v49 = vcvt.s32.f32 %v941_v35  ;;  %v2378_v0 = vshrl.u32 %v1030_v1, 30  ;;  %v487_v43 = vsel %vm485_vm2, %v1314_v62, %v486_v7 }
 0x120   :  { %v490_v3 = vsel %vm488_vm3, %v489_v13, %v1316_v24  ;;  %v581_v25 = vsel %vm2332_vm4, %v1704_v5, %v578_v41  ;;  %v814_v52 = vmul.f32 %v813_v56, %v811_v39  ;;  %vm350_vm7 = vcmp.eq.s32.totalorder %v2134_v33, 0 }
 0x121   :  { %vm482_vm11 = vweird.f32 %v1584_v16  ;;  %v717_v17 = vsel %vm2269_vm10, 0, %v715_v51  ;;  %v946_v38 = vand.u32 2147483647, %v945_v29  ;;  %v1032_v4 = vshll.u32 %v2378_v0, 30 }
 0x122   :  { %v354_v62 = vxor.u32 2147483648, %v2275_v22  ;;  %v582_v24 = vsel %vm2332_vm4, 0, %v580_v20  ;;  %v2626_v34 = vand.u32 2147483647, %v1971_v26  ;;  %vm733_vm13 = vcmp.lt.s32.totalorder %v1971_v26, 0  ;;  %v1320_v11 = vpop.eup %1319 }
 0x123   :  { %v491_v57 = vsel %vm484_vm8, %v487_v43, %v490_v3  ;;  %1323 = vcosq.f32 %v581_v25  ;;  %v949_v32 = vmul.f32 %v948_v49, %v946_v38  ;;  %v2406_v40 = vsub.s32 %v1029_v45, %v1032_v4 }
 0x124   :  { %vm2399_vm12 = vcmp.le.f32.partialorder %v2626_v34, 0.7853982  ;;  %v1322_v48 = vpop.eup %1321  ;;  %1325 = vsinq.f32 %v581_v25  ;;  %v721_v8 = vand.u32 3, %v717_v17  ;;  %v815_v12 = vxor.u32 2147483648, %v814_v52 }
 0x125   :  { %vm868_vm10 = vcmp.lt.s32.totalorder %v2087_v2, 0  ;;  %v2629_v10 = vand.u32 2147483647, %v2087_v2  ;;  %v950_v36 = vxor.u32 2147483648, %v949_v32  ;;  %v952_v31 = vsub.s32 4, %v2261_v6 }
 0x126   :  { %v1035_v28 = vsub.s32 0, %v2406_v40  ;;  %v351_v21 = vxor.u32 2147483648, %v2372_v19  ;;  %v492_v61 = vsel %vm482_vm11, nan, %v491_v57  ;;  %v2424_v47 = vand.u32 3, %v582_v24 }
 0x127   :  { %vm2415_vm14 = vcmp.le.f32.partialorder %v2629_v10, 0.7853982  ;;  %v1073_v53 = vstv %s2370_s10  ;;  %v724_v15 = vxor.u32 2147483648, %v1322_v48  ;;  %v727_v44 = vxor.u32 2147483648, %v1320_v11 }
 0x128   :  { %v951_v60 = vsel %vm868_vm10, %v950_v36, %v949_v32  ;;  %v1216_v37 = vmin.u32 %v1035_v28, %v2406_v40  ;;  %vm723_vm15 = vcmp.eq.s32.totalorder %v721_v8, 0  ;;  %vm726_vm0 = vcmp.eq.s32.totalorder %v721_v8, 2 }
 0x129   :  { %v816_v27 = vsel %vm733_vm13, %v815_v12, %v814_v52  ;;  %v954_v16 = vsel %vm2415_vm14, %v2087_v2, %v951_v60  ;;  %v953_v18 = vsel %vm868_vm10, %v952_v31, %v2261_v6  ;;  %v1077_v45 = vstv %s2392_s11 }
 0x12a   :  { %1327 = vcosq.f32 %v954_v16  ;;  %v1037_v59 = vclz %v1216_v37  ;;  %v2446_v7 = vsel %vm353_vm9, %v354_v62, %v2372_v19  ;;  %vm720_vm1 = vweird.f32 %v1863_v30 }
 0x12b   :  { %vm722_vm2 = vcmp.lt.s32.totalorder %v721_v8, 2  ;;  %1329 = vsinq.f32 %v954_v16  ;;  %v725_v13 = vsel %vm723_vm15, %v1320_v11, %v724_v15  ;;  %v728_v39 = vsel %vm726_vm0, %v727_v44, %v1322_v48 }
 0x12c   :  { %v819_v6 = vsel %vm2399_vm12, %v1971_v26, %v816_v27  ;;  %v1217_v56 = vadd.s32 4294967294, %v1037_v59  ;;  %v2455_v41 = vsel %vm350_vm7, %v2275_v22, %v351_v21  ;;  %v955_v35 = vsel %vm2415_vm14, 0, %v953_v18 }
 0x12d   :  { %v1074_v23 = vmul.f32 %v1073_v53, %v2364_v9  ;;  %v1078_v1 = vmul.f32 %v1077_v45, %v492_v61  ;;  %v2464_v51 = vpop.eup %1323  ;;  %vm591_vm3 = vcmp.eq.s32.totalorder %v2424_v47, 2  ;;  %v1025_v19 = vadd.s32 %v2318_v54, %v2325_v42 }
 0x12e   :  { %vm1218_vm4 = vcmp.lt.s32.totalorder %v1217_v56, 0  ;;  %v1101_v22 = vstv %s2408_s12  ;;  %v1105_v20 = vstv %s2411_s13  ;;  %v1326_v29 = vpop.eup %1325  ;;  %v729_v49 = vsel %vm722_vm2, %v725_v13, %v728_v39 }
 0x12f   :  { %v817_v43 = vsub.s32 4, %v2154_v55  ;;  %1331 = vcosq.f32 %v819_v6  ;;  %v1040_v3 = vsel %vm1218_vm4, 0, %v1217_v56  ;;  %v959_v25 = vand.u32 3, %v955_v35 }
 0x130   :  { %v1041_v52 = vsub.s32 32, %v1040_v3  ;;  %v1042_v54 = vshll.u32 %v2406_v40, %v1040_v3  ;;  %v1045_v42 = vsub.s32 4294967266, %v1040_v3  ;;  %1333 = vsinq.f32 %v819_v6 }
 0x131   :  { %v1083_v17 = vstv %s2435_s2  ;;  %v1102_v38 = vmul.f32 %v1101_v22, %v2364_v9  ;;  %v1106_v4 = vmul.f32 %v1105_v20, %v492_v61  ;;  %vm349_vm5 = vcmp.lt.s32.totalorder %v2134_v33, 2 }
 0x132   :  { %vm587_vm6 = vcmp.lt.s32.totalorder %v2424_v47, 2  ;;  %v730_v62 = vsel %vm720_vm1, nan, %v729_v49  ;;  %v1043_v24 = vshrl.u32 %v1025_v19, %v1041_v52  ;;  %v1046_v34 = vadd.s32 127, %v1045_v42 }
 0x133   :  { %v1111_v11 = vstv %s2441_s4  ;;  %v589_v57 = vxor.u32 2147483648, %v1326_v29  ;;  %v592_v32 = vxor.u32 2147483648, %v2464_v51  ;;  %v818_v9 = vsel %vm733_vm13, %v817_v43, %v2154_v55 }
 0x134   :  { %v1080_v40 = vadd.f32 %v1078_v1, %v1074_v23  ;;  %v1328_v48 = vpop.eup %1327  ;;  %vm961_vm8 = vcmp.eq.s32.totalorder %v959_v25, 0  ;;  %vm964_vm9 = vcmp.eq.s32.totalorder %v959_v25, 2  ;;  %v1044_v30 = vor.u32 %v1043_v24, %v1042_v54 }
 0x135   :  { %v1047_v8 = vshll.u32 %v1046_v34, 23  ;;  %v1330_v12 = vpop.eup %1329  ;;  %v965_v10 = vxor.u32 2147483648, %v1328_v48  ;;  %v1084_v63 = vmul.f32 %v1083_v17, %v730_v62  ;;  %v1108_v36 = vadd.f32 %v1106_v4, %v1102_v38 }
 0x136   :  { %v1112_v31 = vmul.f32 %v1111_v11, %v730_v62  ;;  %vm347_vm7 = vweird.f32 %v1568_v50  ;;  %vm585_vm11 = vweird.f32 %v1704_v5  ;;  %vm960_vm13 = vcmp.lt.s32.totalorder %v959_v25, 2 }
 0x137   :  { %v962_v55 = vxor.u32 2147483648, %v1330_v12  ;;  %v1048_v28 = vor.u32 4788187, %v1047_v8  ;;  %v1051_v21 = vcvt.s32.f32 %v1044_v30  ;;  %vm588_vm10 = vcmp.eq.s32.totalorder %v2424_v47, 0 }
 0x138   :  { %v820_v61 = vsel %vm2399_vm12, 0, %v818_v9  ;;  %vm958_vm14 = vweird.f32 %v2087_v2  ;;  %v966_v15 = vsel %vm964_vm9, %v965_v10, %v1330_v12  ;;  %v1089_v37 = vstv %s2473_s14 }
 0x139   :  { %v963_v44 = vsel %vm961_vm8, %v1328_v48, %v962_v55  ;;  %v1049_v60 = vand.u32 2147483647, %v1048_v28  ;;  %v1117_v27 = vstv %s2476_s15  ;;  %v1332_v16 = vpop.eup %1331  ;;  %v593_v18 = vsel %vm591_vm3, %v592_v32, %v1326_v29 }
 0x13a   :  { %v967_v59 = vsel %vm960_vm13, %v963_v44, %v966_v15  ;;  %v1086_v14 = vadd.f32 %v1084_v63, %v1080_v40  ;;  %v1114_v13 = vadd.f32 %v1112_v31, %v1108_v36  ;;  %v590_v2 = vsel %vm588_vm10, %v2464_v51, %v589_v57  ;;  %v1334_v35 = vpop.eup %1333 }
 0x13b   :  { %v824_v39 = vand.u32 3, %v820_v61  ;;  %v968_v6 = vsel %vm958_vm14, nan, %v967_v59  ;;  %v1052_v56 = vmul.f32 %v1051_v21, %v1049_v60  ;;  %vm2516_vm12 = vcmp.le.f32.partialorder %v969_v46, 0.7853982 }
 0x13c   :  { %vm971_vm15 = vcmp.lt.s32.totalorder %v2142_v58, 0  ;;  %v1090_v1 = vmul.f32 %v1089_v37, %v968_v6  ;;  %v1118_v19 = vmul.f32 %v1117_v27, %v968_v6  ;;  %v1055_v51 = vsub.s32 4, %v2378_v0 }
 0x13d   :  { %v1053_v29 = vxor.u32 2147483648, %v1052_v56  ;;  %v1095_v49 = vstv %s2493_s16  ;;  %v1123_v43 = vstv %s2495_s17  ;;  %v356_v46 = vsel %vm349_vm5, %v2455_v41, %v2446_v7 }
 0x13e   :  { %v594_v3 = vsel %vm587_vm6, %v590_v2, %v593_v18  ;;  %v1092_v25 = vadd.f32 %v1090_v1, %v1086_v14  ;;  %v1120_v52 = vadd.f32 %v1118_v19, %v1114_v13  ;;  %vm826_vm0 = vcmp.eq.s32.totalorder %v824_v39, 0 }
 0x13f   :  { %v827_v54 = vxor.u32 2147483648, %v1334_v35  ;;  %v830_v42 = vxor.u32 2147483648, %v1332_v16  ;;  %v1054_v38 = vsel %vm971_vm15, %v1053_v29, %v1052_v56  ;;  %vm829_vm1 = vcmp.eq.s32.totalorder %v824_v39, 2 }
 0x140   :  { %v1057_v4 = vsel %vm2516_vm12, %v2142_v58, %v1054_v38  ;;  %v1096_v62 = vadd.f32 %v1095_v49, %v1092_v25  ;;  %v1124_v33 = vadd.f32 %v1123_v43, %v1120_v52  ;;  %v1056_v47 = vsel %vm971_vm15, %v1055_v51, %v2378_v0 }
 0x141   :  { %1335 = vcosq.f32 %v1057_v4  ;;  %v357_v7 = vsel %vm347_vm7, nan, %v356_v46  ;;  %v595_v41 = vsel %vm585_vm11, nan, %v594_v3  ;;  %vm825_vm2 = vcmp.lt.s32.totalorder %v824_v39, 2 }
 0x142   :  { %1337 = vsinq.f32 %v1057_v4  ;;  %v828_v24 = vsel %vm826_vm0, %v1332_v16, %v827_v54  ;;  %v831_v34 = vsel %vm829_vm1, %v830_v42, %v1334_v35  ;;  %v1058_v50 = vsel %vm2516_vm12, 0, %v1056_v47 }
 0x143   :  { %1339 = vtanh.f32 %v1096_v62  ;;  %vm823_vm3 = vweird.f32 %v1971_v26  ;;  %v832_v5 = vsel %vm825_vm2, %v828_v24, %v831_v34  ;;  %v1075_v0 = vmul.f32 %v1073_v53, %v357_v7 }
 0x144   :  { %1341 = vtanh.f32 %v1124_v33  ;;  %v1079_v57 = vmul.f32 %v1077_v45, %v595_v41  ;;  %v1062_v32 = vand.u32 3, %v1058_v50  ;;  %v1103_v9 = vmul.f32 %v1101_v22, %v357_v7 }
 0x145   :  { %v1107_v40 = vmul.f32 %v1105_v20, %v595_v41  ;;  %v833_v48 = vsel %vm823_vm3, nan, %v832_v5  ;;  %v1131_v10 = vstv %s2550_s18  ;;  %v1137_v63 = vstv %s2552_s19 }
 0x146   :  { %v1081_v30 = vadd.f32 %v1079_v57, %v1075_v0  ;;  %vm1067_vm4 = vcmp.eq.s32.totalorder %v1062_v32, 2  ;;  %vm1064_vm5 = vcmp.eq.s32.totalorder %v1062_v32, 0  ;;  %v1085_v53 = vmul.f32 %v1083_v17, %v833_v48 }
 0x147   :  { %v1109_v12 = vadd.f32 %v1107_v40, %v1103_v9  ;;  %v1113_v31 = vmul.f32 %v1111_v11, %v833_v48  ;;  %vm1063_vm6 = vcmp.lt.s32.totalorder %v1062_v32, 2  ;;  %v1129_v20 = vstv %s2596_s7 }
 0x148   :  { %vm1061_vm8 = vweird.f32 %v2142_v58  ;;  %v1087_v11 = vadd.f32 %v1085_v53, %v1081_v30 }
 0x149   :  { %v1115_v44 = vadd.f32 %v1113_v31, %v1109_v12 }
 0x14b   :  { %v1336_v8 = vpop.eup %1335 }
 0x14c   :  { %v1338_v26 = vpop.eup %1337  ;;  %v1068_v36 = vxor.u32 2147483648, %v1336_v8 }
 0x14d   :  { %v1340_v45 = vpop.eup %1339  ;;  %v1065_v22 = vxor.u32 2147483648, %v1338_v26 }
 0x14e   :  { %v1342_v55 = vpop.eup %1341  ;;  %v1069_v28 = vsel %vm1067_vm4, %v1068_v36, %v1338_v26  ;;  %v1132_v21 = vmul.f32 %v1340_v45, %v1131_v10 }
 0x14f   :  { %v1066_v61 = vsel %vm1064_vm5, %v1336_v8, %v1065_v22  ;;  %v1138_v17 = vmul.f32 %v1342_v55, %v1137_v63 }
 0x150   :  { %v1070_v15 = vsel %vm1063_vm6, %v1066_v61, %v1069_v28  ;;  %v1134_v60 = vadd.f32 %v1132_v21, %v1129_v20 }
 0x151   :  { %v1071_v16 = vsel %vm1061_vm8, nan, %v1070_v15 }
 0x152   :  { %v1091_v18 = vmul.f32 %v1089_v37, %v1071_v16  ;;  %v1119_v59 = vmul.f32 %v1117_v27, %v1071_v16  ;;  %v1140_v14 = vadd.f32 %v1138_v17, %v1134_v60 }
 0x154   :  { %v1093_v13 = vadd.f32 %v1091_v18, %v1087_v11  ;;  %v1121_v2 = vadd.f32 %v1119_v59, %v1115_v44  ;;  %v1142_v39 = vmul.f32 0.5, %v1140_v14 }
 0x156   :  { %v1097_v58 = vadd.f32 %v1095_v49, %v1093_v13  ;;  %v1125_v6 = vadd.f32 %v1123_v43, %v1121_v2  ;;  %1343 = vtanh.f32 %v1142_v39 }
 0x158   :  { %1345 = vtanh.f32 %v1097_v58 }
 0x159   :  { %1347 = vtanh.f32 %v1125_v6 }
 0x160   :  { %v1344_v56 = vpop.eup %1343 }
 0x161   :  { %v1146_v35 = vadd.f32 1.0, %v1344_v56 }
 0x162   :  { %v1346_v23 = vpop.eup %1345 }
 0x163   :  { %v1348_v1 = vpop.eup %1347  ;;  %v1133_v19 = vmul.f32 %v1346_v23, %v1131_v10  ;;  %v1148_v29 = vmul.f32 0.5, %v1146_v35 }
 0x164   :  { %v1139_v37 = vmul.f32 %v1348_v1, %v1137_v63 }
 0x165   :  { %v1135_v51 = vadd.f32 %v1133_v19, %v1129_v20  ;;  %1150 = vst [vmem:[%s2597_s8] sm:$0xff] %v1148_v29 }
 0x167   :  { %v1141_v27 = vadd.f32 %v1139_v37, %v1135_v51 }
 0x169   :  { %v1143_v46 = vmul.f32 0.5, %v1141_v27 }
 0x16b   :  { %1349 = vtanh.f32 %v1143_v46 }
 0x175   :  { %v1350_v49 = vpop.eup %1349 }
 0x176   :  { %v1147_v43 = vadd.f32 1.0, %v1350_v49 }
 0x178   :  { %v1149_v3 = vmul.f32 0.5, %v1147_v43 }
 0x17a   :  { %1151 = vst [vmem:[%s2597_s8 + $0x8] sm:$0xff] %v1149_v3 }
 0x17b   :  { %1156 = vsyncpa [#allocation4], 1 }
 0x17c   :  { %1157 = vsyncpa [#allocation6], 1 }
 0x17d   :  { %1158 = vsyncpa [#allocation9], 1 }
 0x17e   :  { %1159 = vsyncpa [#allocation12], 1 }

</bundles_post_ra>
